<compile_context>
chip_gen: v5e
topology: v5e:2x2
jax: 0.10.0
libtpu: 0.0.40
codegen_flags: <defaults>
</compile_context>

<pallas_src>
import functools
import math

import jax
import jax.numpy as jnp
from jax.experimental import pallas as pl
from jax.experimental.pallas import tpu as pltpu

# Original module uses SENSOR_SIZE = (256, 160); scaled down for the synthetic test.
SENSOR_SIZE = (32, 32)  # (W, H)

# bf16 operands + f32 accumulation for the big conv/fc matmuls (bf16-native MXU on
# v5e/v6e/v7x; halves cols/weight DMA bytes).  Flip to jnp.float32 for bit-faithful f32.
MATMUL_DTYPE = jnp.bfloat16


def _pick_tile(total, candidates=(2048, 1024, 512, 256, 128)):
    """Largest lane-aligned tile that evenly divides `total` (else the full extent)."""
    for t in candidates:
        if total >= t and total % t == 0:
            return t
    return total


# ------------------------- Conv matmul kernel (lane-dense) ------------------------- #
def _convmm_relu_kernel(w_ref, x_ref, b_ref, o_ref):
    # o[:, tile] = relu(W @ X[:, tile] + b); W is (oc, K), X tile is (K, tn).
    y = jnp.dot(w_ref[...], x_ref[...], preferred_element_type=jnp.float32)
    o_ref[...] = jnp.maximum(y + b_ref[...], 0.0)


def conv2d_relu(x_cnhw, w_oihw, b, *, stride, pad):
    """Conv2d + ReLU on a channels-first (C, N, H, W) activation.

    Patch extraction is XLA glue (strided slices); the matmul+bias+ReLU runs in a Pallas
    kernel computed transposed so the long N*oh*ow axis sits on lanes.  Output keeps the
    (C_out, N, oh, ow) layout for the next layer (no activation transposes between convs).
    """
    c, n, h, wdt = x_cnhw.shape
    oc, ic, kh, kw = w_oihw.shape
    assert c == ic, (c, ic)
    xp = jnp.pad(x_cnhw, ((0, 0), (0, 0), (pad, pad), (pad, pad)))
    oh = (h + 2 * pad - kh) // stride + 1
    ow = (wdt + 2 * pad - kw) // stride + 1
    patches = []
    for ki in range(kh):
        for kj in range(kw):
            patches.append(xp[:, :, ki:ki + stride * oh:stride, kj:kj + stride * ow:stride])
    # (C, kh*kw, N, oh, ow) -> (C*kh*kw, N*oh*ow): row order (c, ki, kj) matches the torch
    # OIHW weight flatten; column order is (n, i, j).
    cols_t = jnp.stack(patches, axis=1).reshape(c * kh * kw, n * oh * ow)
    cols_t = cols_t.astype(MATMUL_DTYPE)
    wmat = w_oihw.reshape(oc, ic * kh * kw).astype(MATMUL_DTYPE)

    K = ic * kh * kw
    R = n * oh * ow
    tn = _pick_tile(R)
    cost = pl.CostEstimate(
        flops=2 * oc * K * R,
        transcendentals=0,
        bytes_accessed=(wmat.size * wmat.dtype.itemsize
                        + cols_t.size * cols_t.dtype.itemsize
                        + oc * 4 + oc * R * 4),
    )
    y_t = pl.pallas_call(
        _convmm_relu_kernel,
        out_shape=jax.ShapeDtypeStruct((oc, R), jnp.float32),
        grid=(R // tn,),
        in_specs=[
            pl.BlockSpec((oc, K), lambda j: (0, 0)),
            pl.BlockSpec((K, tn), lambda j: (0, j)),
            pl.BlockSpec((oc, 1), lambda j: (0, 0)),
        ],
        out_specs=pl.BlockSpec((oc, tn), lambda j: (0, j)),
        compiler_params=pltpu.CompilerParams(dimension_semantics=("parallel",)),
        cost_estimate=cost,
    )(wmat, cols_t, b.reshape(oc, 1).astype(jnp.float32))
    return y_t.reshape(oc, n, oh, ow)


# ------------------------------ FC kernel (K-tiled) ------------------------------ #
def _fc_relu_kernel(x_ref, w_ref, b_ref, o_ref, acc_ref):
    @pl.when(pl.program_id(0) == 0)
    def _():
        acc_ref[...] = jnp.zeros_like(acc_ref)

    acc_ref[...] += jnp.dot(x_ref[...], w_ref[...], preferred_element_type=jnp.float32)

    @pl.when(pl.program_id(0) == pl.num_programs(0) - 1)
    def _():
        o_ref[...] = jnp.maximum(acc_ref[...] + b_ref[...], 0.0)


def fc_relu(x, w, b):
    """relu(x @ w + b), K-tiled with a VMEM f32 accumulator (fits v7x VMEM at real sizes)."""
    M, K = x.shape
    K2, N = w.shape
    assert K == K2, (K, K2)
    tk = _pick_tile(K)
    x = x.astype(MATMUL_DTYPE)
    w = w.astype(MATMUL_DTYPE)
    cost = pl.CostEstimate(
        flops=2 * M * K * N,
        transcendentals=0,
        bytes_accessed=(x.size * x.dtype.itemsize + w.size * w.dtype.itemsize
                        + N * 4 + M * N * 4),
    )
    return pl.pallas_call(
        _fc_relu_kernel,
        out_shape=jax.ShapeDtypeStruct((M, N), jnp.float32),
        grid=(K // tk,),
        in_specs=[
            pl.BlockSpec((M, tk), lambda k: (0, k)),
            pl.BlockSpec((tk, N), lambda k: (k, 0)),
            pl.BlockSpec((1, N), lambda k: (0, 0)),
        ],
        out_specs=pl.BlockSpec((M, N), lambda k: (0, 0)),
        scratch_shapes=[pltpu.VMEM((M, N), jnp.float32)],
        compiler_params=pltpu.CompilerParams(dimension_semantics=("arbitrary",)),
        cost_estimate=cost,
    )(x, w, b.reshape(1, N).astype(jnp.float32))


# ---------------------- Fused policy heads (mean + std, one kernel) ---------------------- #
def _heads_kernel(feat_ref, goal_ref, w1f_ref, w1g_ref, b1_ref, w2_ref, b2_ref,
                  w3_ref, b3_ref, o_ref, *, action_dim, goal_dim):
    # Layer 1, both trunks: columns [0:256] = mean trunk, [256:512] = std trunk.
    # feat contraction stays K=128 aligned; goal_vec columns folded in on the VPU.
    h1 = jnp.dot(feat_ref[...], w1f_ref[...], preferred_element_type=jnp.float32)
    goal = goal_ref[...]
    w1g = w1g_ref[...]
    for g in range(goal_dim):          # tiny static loop; broadcast-mult, no K=130 layout
        h1 = h1 + goal[:, g:g + 1] * w1g[g:g + 1, :]
    h1 = jnp.maximum(h1 + b1_ref[...], 0.0)
    # Layer 2: block-diagonal weights keep the two trunks independent in one MXU dot.
    h2 = jnp.maximum(jnp.dot(h1, w2_ref[...], preferred_element_type=jnp.float32)
                     + b2_ref[...], 0.0)
    # Layer 3: cols [0:A] -> tanh (policy mean), [A:2A] -> softplus + 1e-6 (policy std).
    y = jnp.dot(h2, w3_ref[...], preferred_element_type=jnp.float32) + b3_ref[...]
    col = jax.lax.broadcasted_iota(jnp.int32, y.shape, 1)
    o_ref[...] = jnp.where(col < action_dim, jnp.tanh(y), jnp.logaddexp(y, 0.0) + 1e-6)


def policy_heads(feat, goal_vec, hp):
    M, F = feat.shape
    _, G = goal_vec.shape
    A = hp["w3"].shape[1] // 2
    H1 = hp["w1f"].shape[1]
    H2 = hp["w2"].shape[1]
    out = pl.pallas_call(
        functools.partial(_heads_kernel, action_dim=A, goal_dim=G),
        out_shape=jax.ShapeDtypeStruct((M, 2 * A), jnp.float32),
        grid=(1,),
        in_specs=[
            pl.BlockSpec((M, F), lambda i: (0, 0)),
            pl.BlockSpec((M, G), lambda i: (0, 0)),
            pl.BlockSpec((F, H1), lambda i: (0, 0)),
            pl.BlockSpec((G, H1), lambda i: (0, 0)),
            pl.BlockSpec((1, H1), lambda i: (0, 0)),
            pl.BlockSpec((H1, H2), lambda i: (0, 0)),
            pl.BlockSpec((1, H2), lambda i: (0, 0)),
            pl.BlockSpec((H2, 2 * A), lambda i: (0, 0)),
            pl.BlockSpec((1, 2 * A), lambda i: (0, 0)),
        ],
        out_specs=pl.BlockSpec((M, 2 * A), lambda i: (0, 0)),
        compiler_params=pltpu.CompilerParams(dimension_semantics=("arbitrary",)),
    )(feat, goal_vec, hp["w1f"], hp["w1g"], hp["b1"], hp["w2"], hp["b2"],
      hp["w3"], hp["b3"])
    return out[:, :A], out[:, A:]


# ----------------------------- Parameter init / prep ------------------------------ #
def _init_linear(key, fan_in, fan_out):
    k1, k2 = jax.random.split(key)
    bound = 1.0 / math.sqrt(fan_in)
    w = jax.random.uniform(k1, (fan_in, fan_out), jnp.float32, -bound, bound)
    b = jax.random.uniform(k2, (fan_out,), jnp.float32, -bound, bound)
    return w, b


def _init_conv(key, oc, ic, kh, kw):
    k1, k2 = jax.random.split(key)
    fan_in = ic * kh * kw
    bound = 1.0 / math.sqrt(fan_in)
    w = jax.random.uniform(k1, (oc, ic, kh, kw), jnp.float32, -bound, bound)
    b = jax.random.uniform(k2, (oc,), jnp.float32, -bound, bound)
    return w, b


def init_params(key, feature_dim=128, goal_vec_dim=2, action_dim=2, input_channels=6):
    W, H = SENSOR_SIZE
    h1 = (H + 2 * 2 - 8) // 4 + 1
    w1 = (W + 2 * 2 - 8) // 4 + 1
    h2 = (h1 + 2 * 1 - 4) // 2 + 1
    w2 = (w1 + 2 * 1 - 4) // 2 + 1
    h3 = (h2 + 2 * 1 - 3) // 1 + 1
    w3 = (w2 + 2 * 1 - 3) // 1 + 1
    conv_output_size = 64 * h3 * w3

    ks = jax.random.split(key, 12)
    p = {}
    p["c1_w"], p["c1_b"] = _init_conv(ks[0], 32, input_channels, 8, 8)
    p["c2_w"], p["c2_b"] = _init_conv(ks[1], 64, 32, 4, 4)
    p["c3_w"], p["c3_b"] = _init_conv(ks[2], 64, 64, 3, 3)
    p["fc_w"], p["fc_b"] = _init_linear(ks[3], conv_output_size, feature_dim)

    combined_dim = feature_dim + goal_vec_dim
    p["pm1_w"], p["pm1_b"] = _init_linear(ks[4], combined_dim, 256)
    p["pm2_w"], p["pm2_b"] = _init_linear(ks[5], 256, 128)
    p["pm3_w"], p["pm3_b"] = _init_linear(ks[6], 128, action_dim)
    p["ps1_w"], p["ps1_b"] = _init_linear(ks[7], combined_dim, 256)
    p["ps2_w"], p["ps2_b"] = _init_linear(ks[8], 256, 128)
    p["sig_w"], p["sig_b"] = _init_linear(ks[9], 128, action_dim)
    # nn.init.constant_(self.sigma_linear.bias, log(exp(3) - 1))
    p["sig_b"] = jnp.full((action_dim,), math.log(math.exp(3.0) - 1.0), jnp.float32)
    return p


def prepare_params(p, feature_dim=128):
    """One-time layout prep: bf16 matmul weights + fused / block-diagonal head weights."""
    prep = {
        "c1_w": p["c1_w"].astype(MATMUL_DTYPE), "c1_b": p["c1_b"],
        "c2_w": p["c2_w"].astype(MATMUL_DTYPE), "c2_b": p["c2_b"],
        "c3_w": p["c3_w"].astype(MATMUL_DTYPE), "c3_b": p["c3_b"],
        "fc_w": p["fc_w"].astype(MATMUL_DTYPE), "fc_b": p["fc_b"],
    }
    h1m, h1s = p["pm1_w"].shape[1], p["ps1_w"].shape[1]
    h2m, h2s = p["pm2_w"].shape[1], p["ps2_w"].shape[1]
    A = p["pm3_w"].shape[1]
    w1 = jnp.concatenate([p["pm1_w"], p["ps1_w"]], axis=1)            # (F+G, 512)
    w2 = jnp.zeros((h1m + h1s, h2m + h2s), jnp.float32)
    w2 = w2.at[:h1m, :h2m].set(p["pm2_w"]).at[h1m:, h2m:].set(p["ps2_w"])
    w3 = jnp.zeros((h2m + h2s, 2 * A), jnp.float32)
    w3 = w3.at[:h2m, :A].set(p["pm3_w"]).at[h2m:, A:].set(p["sig_w"])
    prep["head"] = {
        "w1f": w1[:feature_dim],                                      # (F, 512)
        "w1g": w1[feature_dim:],                                      # (G, 512)
        "b1": jnp.concatenate([p["pm1_b"], p["ps1_b"]]).reshape(1, -1),
        "w2": w2,
        "b2": jnp.concatenate([p["pm2_b"], p["ps2_b"]]).reshape(1, -1),
        "w3": w3,
        "b3": jnp.concatenate([p["pm3_b"], p["sig_b"]]).reshape(1, -1),
    }
    return prep


# ------------------------------------ Forward ------------------------------------- #
def ppo_forward(prep, images, goal_vec):
    # CNNFeatureExtractor: channels-first CNHW layout between conv layers (no per-layer
    # activation transposes; conv kernels already emit (C_out, N*oh*ow)).
    x = jnp.transpose(images, (1, 0, 2, 3))                  # NCHW -> CNHW (input only)
    x = conv2d_relu(x, prep["c1_w"], prep["c1_b"], stride=4, pad=2)
    x = conv2d_relu(x, prep["c2_w"], prep["c2_b"], stride=2, pad=1)
    x = conv2d_relu(x, prep["c3_w"], prep["c3_b"], stride=1, pad=1)
    # One transpose of the SMALLEST activation reproduces torch's NCHW .view(batch, -1).
    n = x.shape[1]
    flat = jnp.transpose(x, (1, 0, 2, 3)).reshape(n, -1)
    feat = fc_relu(flat, prep["fc_w"], prep["fc_b"])          # (N, feature_dim)

    # TODO(synk): original forward references self.policy_head which is not defined in
    # __init__; mapped to self.policy_mean (the Tanh-terminated head), the clear intent.
    mean, std = policy_heads(feat, goal_vec, prep["head"])    # concat + both heads fused
    return mean, std


if __name__ == "__main__":
    key = jax.random.PRNGKey(0)
    k_img, k_goal, k_param = jax.random.split(key, 3)

    batch = 2
    W, H = SENSOR_SIZE
    images = jax.random.normal(k_img, (batch, 6, H, W), jnp.float32)   # NCHW
    goal_vec = jax.random.normal(k_goal, (batch, 2), jnp.float32)

    feature_dim = 128
    params = init_params(k_param, feature_dim=feature_dim, goal_vec_dim=2, action_dim=2)
    prep = prepare_params(params, feature_dim=feature_dim)

    mean, std = jax.jit(ppo_forward)(prep, images, goal_vec)
    jax.block_until_ready((mean, std))
    assert mean.shape == (batch, 2) and std.shape == (batch, 2)
    print("KERNEL_OK")
</pallas_src>

<mosaic_0001>
module attributes {stable_mosaic.version = 11 : i64} {
  func.func @_convmm_relu_kernel(%arg0: i32, %arg1: memref<32x384xbf16, #tpu.memory_space<vmem>>, %arg2: memref<384x128xbf16, #tpu.memory_space<vmem>>, %arg3: memref<32x1xf32, #tpu.memory_space<vmem>>, %arg4: memref<32x128xf32, #tpu.memory_space<vmem>>) attributes {dimension_semantics = [#tpu.dimension_semantics<parallel>], iteration_bounds = array<i64: 1>, scalar_prefetch = 0 : i64, scratch_operands = 0 : i64, tpu.core_type = #tpu.core_type<tc>, window_params = [{pipeline_mode = #tpu.pipeline_mode<synchronous>, transform_indices = @transform_0, window_bounds = array<i64: 32, 384>}, {transform_indices = @transform_1, window_bounds = array<i64: 384, 128>}, {pipeline_mode = #tpu.pipeline_mode<synchronous>, transform_indices = @transform_2, window_bounds = array<i64: 32, 1>}, {transform_indices = @transform_3, window_bounds = array<i64: 32, 128>}]} {
    %c0 = arith.constant 0 : index
    %c0_0 = arith.constant 0 : index
    %0 = vector.load %arg1[%c0, %c0_0] : memref<32x384xbf16, #tpu.memory_space<vmem>>, vector<32x384xbf16>
    %c0_1 = arith.constant 0 : index
    %c0_2 = arith.constant 0 : index
    %1 = vector.load %arg2[%c0_1, %c0_2] : memref<384x128xbf16, #tpu.memory_space<vmem>>, vector<384x128xbf16>
    %cst = arith.constant dense<0.000000e+00> : vector<32x128xf32>
    %2 = tpu.matmul %0, %1, %cst {dimension_numbers = #tpu.dot_dimension_numbers<[1], [0], [0], [1], [0, 0, 1, 1], [], []>} : vector<32x384xbf16>, vector<384x128xbf16>, vector<32x128xf32> -> vector<32x128xf32>
    %c0_3 = arith.constant 0 : index
    %c0_4 = arith.constant 0 : index
    %3 = vector.load %arg3[%c0_3, %c0_4] : memref<32x1xf32, #tpu.memory_space<vmem>>, vector<32x1xf32>
    %4 = vector.broadcast %3 : vector<32x1xf32> to vector<32x128xf32>
    %5 = arith.addf %2, %4 : vector<32x128xf32>
    %cst_5 = arith.constant 0.000000e+00 : f32
    %6 = vector.broadcast %cst_5 : f32 to vector<32x128xf32>
    %7 = arith.maximumf %5, %6 : vector<32x128xf32>
    %c0_6 = arith.constant 0 : index
    %c0_7 = arith.constant 0 : index
    %8 = vector.load %arg4[%c0_6, %c0_7] : memref<32x128xf32, #tpu.memory_space<vmem>>, vector<32x128xf32>
    tpu.vector_store %arg4[%c0_6, %c0_7], %7 {strides = array<i32>} : memref<32x128xf32, #tpu.memory_space<vmem>>, vector<32x128xf32>,
    return
  }
  func.func @transform_0(%arg0: i32) -> (i32, i32) {
    %c0_i32 = arith.constant 0 : i32
    %c0_i32_0 = arith.constant 0 : i32
    %c0_i32_1 = arith.constant 0 : i32
    return %c0_i32, %c0_i32_0 : i32, i32
  }
  func.func @transform_1(%arg0: i32) -> (i32, i32) {
    %c0_i32 = arith.constant 0 : i32
    %c0_i32_0 = arith.constant 0 : i32
    return %c0_i32, %arg0 : i32, i32
  }
  func.func @transform_2(%arg0: i32) -> (i32, i32) {
    %c0_i32 = arith.constant 0 : i32
    %c0_i32_0 = arith.constant 0 : i32
    %c0_i32_1 = arith.constant 0 : i32
    return %c0_i32, %c0_i32_0 : i32, i32
  }
  func.func @transform_3(%arg0: i32) -> (i32, i32) {
    %c0_i32 = arith.constant 0 : i32
    %c0_i32_0 = arith.constant 0 : i32
    return %c0_i32, %arg0 : i32, i32
  }
}

module attributes {stable_mosaic.version = 11 : i64} {
  func.func @_convmm_relu_kernel(%arg0: i32, %arg1: memref<64x512xbf16, #tpu.memory_space<vmem>>, %arg2: memref<512x32xbf16, #tpu.memory_space<vmem>>, %arg3: memref<64x1xf32, #tpu.memory_space<vmem>>, %arg4: memref<64x32xf32, #tpu.memory_space<vmem>>) attributes {dimension_semantics = [#tpu.dimension_semantics<parallel>], iteration_bounds = array<i64: 1>, scalar_prefetch = 0 : i64, scratch_operands = 0 : i64, tpu.core_type = #tpu.core_type<tc>, window_params = [{pipeline_mode = #tpu.pipeline_mode<synchronous>, transform_indices = @transform_0, window_bounds = array<i64: 64, 512>}, {transform_indices = @transform_1, window_bounds = array<i64: 512, 32>}, {pipeline_mode = #tpu.pipeline_mode<synchronous>, transform_indices = @transform_2, window_bounds = array<i64: 64, 1>}, {transform_indices = @transform_3, window_bounds = array<i64: 64, 32>}]} {
    %c0 = arith.constant 0 : index
    %c0_0 = arith.constant 0 : index
    %0 = vector.load %arg1[%c0, %c0_0] : memref<64x512xbf16, #tpu.memory_space<vmem>>, vector<64x512xbf16>
    %c0_1 = arith.constant 0 : index
    %c0_2 = arith.constant 0 : index
    %1 = vector.load %arg2[%c0_1, %c0_2] : memref<512x32xbf16, #tpu.memory_space<vmem>>, vector<512x32xbf16>
    %cst = arith.constant dense<0.000000e+00> : vector<64x32xf32>
    %2 = tpu.matmul %0, %1, %cst {dimension_numbers = #tpu.dot_dimension_numbers<[1], [0], [0], [1], [0, 0, 1, 1], [], []>} : vector<64x512xbf16>, vector<512x32xbf16>, vector<64x32xf32> -> vector<64x32xf32>
    %c0_3 = arith.constant 0 : index
    %c0_4 = arith.constant 0 : index
    %3 = vector.load %arg3[%c0_3, %c0_4] : memref<64x1xf32, #tpu.memory_space<vmem>>, vector<64x1xf32>
    %4 = vector.broadcast %3 : vector<64x1xf32> to vector<64x32xf32>
    %5 = arith.addf %2, %4 : vector<64x32xf32>
    %cst_5 = arith.constant 0.000000e+00 : f32
    %6 = vector.broadcast %cst_5 : f32 to vector<64x32xf32>
    %7 = arith.maximumf %5, %6 : vector<64x32xf32>
    %c0_6 = arith.constant 0 : index
    %c0_7 = arith.constant 0 : index
    %8 = vector.load %arg4[%c0_6, %c0_7] : memref<64x32xf32, #tpu.memory_space<vmem>>, vector<64x32xf32>
    tpu.vector_store %arg4[%c0_6, %c0_7], %7 {strides = array<i32>} : memref<64x32xf32, #tpu.memory_space<vmem>>, vector<64x32xf32>,
    return
  }
  func.func @transform_0(%arg0: i32) -> (i32, i32) {
    %c0_i32 = arith.constant 0 : i32
    %c0_i32_0 = arith.constant 0 : i32
    %c0_i32_1 = arith.constant 0 : i32
    return %c0_i32, %c0_i32_0 : i32, i32
  }
  func.func @transform_1(%arg0: i32) -> (i32, i32) {
    %c0_i32 = arith.constant 0 : i32
    %c0_i32_0 = arith.constant 0 : i32
    return %c0_i32, %arg0 : i32, i32
  }
  func.func @transform_2(%arg0: i32) -> (i32, i32) {
    %c0_i32 = arith.constant 0 : i32
    %c0_i32_0 = arith.constant 0 : i32
    %c0_i32_1 = arith.constant 0 : i32
    return %c0_i32, %c0_i32_0 : i32, i32
  }
  func.func @transform_3(%arg0: i32) -> (i32, i32) {
    %c0_i32 = arith.constant 0 : i32
    %c0_i32_0 = arith.constant 0 : i32
    return %c0_i32, %arg0 : i32, i32
  }
}

module attributes {stable_mosaic.version = 11 : i64} {
  func.func @_convmm_relu_kernel(%arg0: i32, %arg1: memref<64x576xbf16, #tpu.memory_space<vmem>>, %arg2: memref<576x32xbf16, #tpu.memory_space<vmem>>, %arg3: memref<64x1xf32, #tpu.memory_space<vmem>>, %arg4: memref<64x32xf32, #tpu.memory_space<vmem>>) attributes {dimension_semantics = [#tpu.dimension_semantics<parallel>], iteration_bounds = array<i64: 1>, scalar_prefetch = 0 : i64, scratch_operands = 0 : i64, tpu.core_type = #tpu.core_type<tc>, window_params = [{pipeline_mode = #tpu.pipeline_mode<synchronous>, transform_indices = @transform_0, window_bounds = array<i64: 64, 576>}, {transform_indices = @transform_1, window_bounds = array<i64: 576, 32>}, {pipeline_mode = #tpu.pipeline_mode<synchronous>, transform_indices = @transform_2, window_bounds = array<i64: 64, 1>}, {transform_indices = @transform_3, window_bounds = array<i64: 64, 32>}]} {
    %c0 = arith.constant 0 : index
    %c0_0 = arith.constant 0 : index
    %0 = vector.load %arg1[%c0, %c0_0] : memref<64x576xbf16, #tpu.memory_space<vmem>>, vector<64x576xbf16>
    %c0_1 = arith.constant 0 : index
    %c0_2 = arith.constant 0 : index
    %1 = vector.load %arg2[%c0_1, %c0_2] : memref<576x32xbf16, #tpu.memory_space<vmem>>, vector<576x32xbf16>
    %cst = arith.constant dense<0.000000e+00> : vector<64x32xf32>
    %2 = tpu.matmul %0, %1, %cst {dimension_numbers = #tpu.dot_dimension_numbers<[1], [0], [0], [1], [0, 0, 1, 1], [], []>} : vector<64x576xbf16>, vector<576x32xbf16>, vector<64x32xf32> -> vector<64x32xf32>
    %c0_3 = arith.constant 0 : index
    %c0_4 = arith.constant 0 : index
    %3 = vector.load %arg3[%c0_3, %c0_4] : memref<64x1xf32, #tpu.memory_space<vmem>>, vector<64x1xf32>
    %4 = vector.broadcast %3 : vector<64x1xf32> to vector<64x32xf32>
    %5 = arith.addf %2, %4 : vector<64x32xf32>
    %cst_5 = arith.constant 0.000000e+00 : f32
    %6 = vector.broadcast %cst_5 : f32 to vector<64x32xf32>
    %7 = arith.maximumf %5, %6 : vector<64x32xf32>
    %c0_6 = arith.constant 0 : index
    %c0_7 = arith.constant 0 : index
    %8 = vector.load %arg4[%c0_6, %c0_7] : memref<64x32xf32, #tpu.memory_space<vmem>>, vector<64x32xf32>
    tpu.vector_store %arg4[%c0_6, %c0_7], %7 {strides = array<i32>} : memref<64x32xf32, #tpu.memory_space<vmem>>, vector<64x32xf32>,
    return
  }
  func.func @transform_0(%arg0: i32) -> (i32, i32) {
    %c0_i32 = arith.constant 0 : i32
    %c0_i32_0 = arith.constant 0 : i32
    %c0_i32_1 = arith.constant 0 : i32
    return %c0_i32, %c0_i32_0 : i32, i32
  }
  func.func @transform_1(%arg0: i32) -> (i32, i32) {
    %c0_i32 = arith.constant 0 : i32
    %c0_i32_0 = arith.constant 0 : i32
    return %c0_i32, %arg0 : i32, i32
  }
  func.func @transform_2(%arg0: i32) -> (i32, i32) {
    %c0_i32 = arith.constant 0 : i32
    %c0_i32_0 = arith.constant 0 : i32
    %c0_i32_1 = arith.constant 0 : i32
    return %c0_i32, %c0_i32_0 : i32, i32
  }
  func.func @transform_3(%arg0: i32) -> (i32, i32) {
    %c0_i32 = arith.constant 0 : i32
    %c0_i32_0 = arith.constant 0 : i32
    return %c0_i32, %arg0 : i32, i32
  }
}

module attributes {stable_mosaic.version = 11 : i64} {
  func.func @_fc_relu_kernel(%arg0: i32, %arg1: memref<2x1024xbf16, #tpu.memory_space<vmem>>, %arg2: memref<1024x128xbf16, #tpu.memory_space<vmem>>, %arg3: memref<1x128xf32, #tpu.memory_space<vmem>>, %arg4: memref<2x128xf32, #tpu.memory_space<vmem>>, %arg5: memref<2x128xf32, #tpu.memory_space<vmem>>) attributes {dimension_semantics = [#tpu.dimension_semantics<arbitrary>], iteration_bounds = array<i64: 1>, scalar_prefetch = 0 : i64, scratch_operands = 1 : i64, tpu.core_type = #tpu.core_type<tc>, window_params = [{transform_indices = @transform_0, window_bounds = array<i64: 2, 1024>}, {transform_indices = @transform_1, window_bounds = array<i64: 1024, 128>}, {pipeline_mode = #tpu.pipeline_mode<synchronous>, transform_indices = @transform_2, window_bounds = array<i64: 1, 128>}, {pipeline_mode = #tpu.pipeline_mode<synchronous>, transform_indices = @transform_3, window_bounds = array<i64: 2, 128>}]} {
    %c0_i32 = arith.constant 0 : i32
    %0 = arith.cmpi eq, %arg0, %c0_i32 : i32
    %1 = arith.extui %0 : i1 to i32
    %c0_i32_0 = arith.constant 0 : i32
    %2 = arith.cmpi ne, %1, %c0_i32_0 : i32
    scf.if %2 {
      %cst_10 = arith.constant 0.000000e+00 : f32
      %12 = vector.broadcast %cst_10 : f32 to vector<2x128xf32>
      %c0_11 = arith.constant 0 : index
      %c0_12 = arith.constant 0 : index
      %13 = vector.load %arg5[%c0_11, %c0_12] : memref<2x128xf32, #tpu.memory_space<vmem>>, vector<2x128xf32>
      tpu.vector_store %arg5[%c0_11, %c0_12], %12 {strides = array<i32>} : memref<2x128xf32, #tpu.memory_space<vmem>>, vector<2x128xf32>,
    } else {
    }
    %c0 = arith.constant 0 : index
    %c0_1 = arith.constant 0 : index
    %3 = vector.load %arg5[%c0, %c0_1] : memref<2x128xf32, #tpu.memory_space<vmem>>, vector<2x128xf32>
    %c0_2 = arith.constant 0 : index
    %c0_3 = arith.constant 0 : index
    %4 = vector.load %arg1[%c0_2, %c0_3] : memref<2x1024xbf16, #tpu.memory_space<vmem>>, vector<2x1024xbf16>
    %c0_4 = arith.constant 0 : index
    %c0_5 = arith.constant 0 : index
    %5 = vector.load %arg2[%c0_4, %c0_5] : memref<1024x128xbf16, #tpu.memory_space<vmem>>, vector<1024x128xbf16>
    %cst = arith.constant dense<0.000000e+00> : vector<2x128xf32>
    %6 = tpu.matmul %4, %5, %cst {dimension_numbers = #tpu.dot_dimension_numbers<[1], [0], [0], [1], [0, 0, 1, 1], [], []>} : vector<2x1024xbf16>, vector<1024x128xbf16>, vector<2x128xf32> -> vector<2x128xf32>
    %7 = arith.addf %3, %6 : vector<2x128xf32>
    %c0_6 = arith.constant 0 : index
    %c0_7 = arith.constant 0 : index
    %8 = vector.load %arg5[%c0_6, %c0_7] : memref<2x128xf32, #tpu.memory_space<vmem>>, vector<2x128xf32>
    tpu.vector_store %arg5[%c0_6, %c0_7], %7 {strides = array<i32>} : memref<2x128xf32, #tpu.memory_space<vmem>>, vector<2x128xf32>,
    %c0_i32_8 = arith.constant 0 : i32
    %9 = arith.cmpi eq, %arg0, %c0_i32_8 : i32
    %10 = arith.extui %9 : i1 to i32
    %c0_i32_9 = arith.constant 0 : i32
    %11 = arith.cmpi ne, %10, %c0_i32_9 : i32
    scf.if %11 {
      %c0_10 = arith.constant 0 : index
      %c0_11 = arith.constant 0 : index
      %12 = vector.load %arg5[%c0_10, %c0_11] : memref<2x128xf32, #tpu.memory_space<vmem>>, vector<2x128xf32>
      %c0_12 = arith.constant 0 : index
      %c0_13 = arith.constant 0 : index
      %13 = vector.load %arg3[%c0_12, %c0_13] : memref<1x128xf32, #tpu.memory_space<vmem>>, vector<1x128xf32>
      %14 = vector.broadcast %13 : vector<1x128xf32> to vector<2x128xf32>
      %15 = arith.addf %12, %14 : vector<2x128xf32>
      %cst_14 = arith.constant 0.000000e+00 : f32
      %16 = vector.broadcast %cst_14 : f32 to vector<2x128xf32>
      %17 = arith.maximumf %15, %16 : vector<2x128xf32>
      %c0_15 = arith.constant 0 : index
      %c0_16 = arith.constant 0 : index
      %18 = vector.load %arg4[%c0_15, %c0_16] : memref<2x128xf32, #tpu.memory_space<vmem>>, vector<2x128xf32>
      tpu.vector_store %arg4[%c0_15, %c0_16], %17 {strides = array<i32>} : memref<2x128xf32, #tpu.memory_space<vmem>>, vector<2x128xf32>,
    } else {
    }
    return
  }
  func.func @transform_0(%arg0: i32) -> (i32, i32) {
    %c0_i32 = arith.constant 0 : i32
    %c0_i32_0 = arith.constant 0 : i32
    return %c0_i32, %arg0 : i32, i32
  }
  func.func @transform_1(%arg0: i32) -> (i32, i32) {
    %c0_i32 = arith.constant 0 : i32
    %c0_i32_0 = arith.constant 0 : i32
    return %arg0, %c0_i32 : i32, i32
  }
  func.func @transform_2(%arg0: i32) -> (i32, i32) {
    %c0_i32 = arith.constant 0 : i32
    %c0_i32_0 = arith.constant 0 : i32
    %c0_i32_1 = arith.constant 0 : i32
    return %c0_i32, %c0_i32_0 : i32, i32
  }
  func.func @transform_3(%arg0: i32) -> (i32, i32) {
    %c0_i32 = arith.constant 0 : i32
    %c0_i32_0 = arith.constant 0 : i32
    %c0_i32_1 = arith.constant 0 : i32
    return %c0_i32, %c0_i32_0 : i32, i32
  }
}

module attributes {stable_mosaic.version = 11 : i64} {
  func.func @_heads_kernel(%arg0: i32, %arg1: memref<2x128xf32, #tpu.memory_space<vmem>>, %arg2: memref<2x2xf32, #tpu.memory_space<vmem>>, %arg3: memref<128x512xf32, #tpu.memory_space<vmem>>, %arg4: memref<2x512xf32, #tpu.memory_space<vmem>>, %arg5: memref<1x512xf32, #tpu.memory_space<vmem>>, %arg6: memref<512x256xf32, #tpu.memory_space<vmem>>, %arg7: memref<1x256xf32, #tpu.memory_space<vmem>>, %arg8: memref<256x4xf32, #tpu.memory_space<vmem>>, %arg9: memref<1x4xf32, #tpu.memory_space<vmem>>, %arg10: memref<2x4xf32, #tpu.memory_space<vmem>>) attributes {dimension_semantics = [#tpu.dimension_semantics<arbitrary>], iteration_bounds = array<i64: 1>, scalar_prefetch = 0 : i64, scratch_operands = 0 : i64, tpu.core_type = #tpu.core_type<tc>, window_params = [{pipeline_mode = #tpu.pipeline_mode<synchronous>, transform_indices = @transform_0, window_bounds = array<i64: 2, 128>}, {pipeline_mode = #tpu.pipeline_mode<synchronous>, transform_indices = @transform_1, window_bounds = array<i64: 2, 2>}, {pipeline_mode = #tpu.pipeline_mode<synchronous>, transform_indices = @transform_2, window_bounds = array<i64: 128, 512>}, {pipeline_mode = #tpu.pipeline_mode<synchronous>, transform_indices = @transform_3, window_bounds = array<i64: 2, 512>}, {pipeline_mode = #tpu.pipeline_mode<synchronous>, transform_indices = @transform_4, window_bounds = array<i64: 1, 512>}, {pipeline_mode = #tpu.pipeline_mode<synchronous>, transform_indices = @transform_5, window_bounds = array<i64: 512, 256>}, {pipeline_mode = #tpu.pipeline_mode<synchronous>, transform_indices = @transform_6, window_bounds = array<i64: 1, 256>}, {pipeline_mode = #tpu.pipeline_mode<synchronous>, transform_indices = @transform_7, window_bounds = array<i64: 256, 4>}, {pipeline_mode = #tpu.pipeline_mode<synchronous>, transform_indices = @transform_8, window_bounds = array<i64: 1, 4>}, {pipeline_mode = #tpu.pipeline_mode<synchronous>, transform_indices = @transform_9, window_bounds = array<i64: 2, 4>}]} {
    %c0 = arith.constant 0 : index
    %c0_0 = arith.constant 0 : index
    %0 = vector.load %arg1[%c0, %c0_0] : memref<2x128xf32, #tpu.memory_space<vmem>>, vector<2x128xf32>
    %c0_1 = arith.constant 0 : index
    %c0_2 = arith.constant 0 : index
    %1 = vector.load %arg3[%c0_1, %c0_2] : memref<128x512xf32, #tpu.memory_space<vmem>>, vector<128x512xf32>
    %cst = arith.constant dense<0.000000e+00> : vector<2x512xf32>
    %2 = tpu.matmul %0, %1, %cst {dimension_numbers = #tpu.dot_dimension_numbers<[1], [0], [0], [1], [0, 0, 1, 1], [], []>} : vector<2x128xf32>, vector<128x512xf32>, vector<2x512xf32> -> vector<2x512xf32>
    %c0_3 = arith.constant 0 : index
    %c0_4 = arith.constant 0 : index
    %3 = vector.load %arg2[%c0_3, %c0_4] : memref<2x2xf32, #tpu.memory_space<vmem>>, vector<2x2xf32>
    %c0_5 = arith.constant 0 : index
    %c0_6 = arith.constant 0 : index
    %4 = vector.load %arg4[%c0_5, %c0_6] : memref<2x512xf32, #tpu.memory_space<vmem>>, vector<2x512xf32>
    %5 = vector.extract_strided_slice %3 {offsets = [0, 0], sizes = [2, 1], strides = [1, 1]} : vector<2x2xf32> to vector<2x1xf32>
    %6 = vector.extract_strided_slice %4 {offsets = [0, 0], sizes = [1, 512], strides = [1, 1]} : vector<2x512xf32> to vector<1x512xf32>
    %7 = vector.broadcast %5 : vector<2x1xf32> to vector<2x512xf32>
    %8 = vector.broadcast %6 : vector<1x512xf32> to vector<2x512xf32>
    %9 = arith.mulf %7, %8 : vector<2x512xf32>
    %10 = arith.addf %2, %9 : vector<2x512xf32>
    %11 = vector.extract_strided_slice %3 {offsets = [0, 1], sizes = [2, 1], strides = [1, 1]} : vector<2x2xf32> to vector<2x1xf32>
    %12 = vector.extract_strided_slice %4 {offsets = [1, 0], sizes = [1, 512], strides = [1, 1]} : vector<2x512xf32> to vector<1x512xf32>
    %13 = vector.broadcast %11 : vector<2x1xf32> to vector<2x512xf32>
    %14 = vector.broadcast %12 : vector<1x512xf32> to vector<2x512xf32>
    %15 = arith.mulf %13, %14 : vector<2x512xf32>
    %16 = arith.addf %10, %15 : vector<2x512xf32>
    %c0_7 = arith.constant 0 : index
    %c0_8 = arith.constant 0 : index
    %17 = vector.load %arg5[%c0_7, %c0_8] : memref<1x512xf32, #tpu.memory_space<vmem>>, vector<1x512xf32>
    %18 = vector.broadcast %17 : vector<1x512xf32> to vector<2x512xf32>
    %19 = arith.addf %16, %18 : vector<2x512xf32>
    %cst_9 = arith.constant 0.000000e+00 : f32
    %20 = vector.broadcast %cst_9 : f32 to vector<2x512xf32>
    %21 = arith.maximumf %19, %20 : vector<2x512xf32>
    %c0_10 = arith.constant 0 : index
    %c0_11 = arith.constant 0 : index
    %22 = vector.load %arg6[%c0_10, %c0_11] : memref<512x256xf32, #tpu.memory_space<vmem>>, vector<512x256xf32>
    %cst_12 = arith.constant dense<0.000000e+00> : vector<2x256xf32>
    %23 = tpu.matmul %21, %22, %cst_12 {dimension_numbers = #tpu.dot_dimension_numbers<[1], [0], [0], [1], [0, 0, 1, 1], [], []>} : vector<2x512xf32>, vector<512x256xf32>, vector<2x256xf32> -> vector<2x256xf32>
    %c0_13 = arith.constant 0 : index
    %c0_14 = arith.constant 0 : index
    %24 = vector.load %arg7[%c0_13, %c0_14] : memref<1x256xf32, #tpu.memory_space<vmem>>, vector<1x256xf32>
    %25 = vector.broadcast %24 : vector<1x256xf32> to vector<2x256xf32>
    %26 = arith.addf %23, %25 : vector<2x256xf32>
    %cst_15 = arith.constant 0.000000e+00 : f32
    %27 = vector.broadcast %cst_15 : f32 to vector<2x256xf32>
    %28 = arith.maximumf %26, %27 : vector<2x256xf32>
    %c0_16 = arith.constant 0 : index
    %c0_17 = arith.constant 0 : index
    %29 = vector.load %arg8[%c0_16, %c0_17] : memref<256x4xf32, #tpu.memory_space<vmem>>, vector<256x4xf32>
    %cst_18 = arith.constant dense<0.000000e+00> : vector<2x4xf32>
    %30 = tpu.matmul %28, %29, %cst_18 {dimension_numbers = #tpu.dot_dimension_numbers<[1], [0], [0], [1], [0, 0, 1, 1], [], []>} : vector<2x256xf32>, vector<256x4xf32>, vector<2x4xf32> -> vector<2x4xf32>
    %c0_19 = arith.constant 0 : index
    %c0_20 = arith.constant 0 : index
    %31 = vector.load %arg9[%c0_19, %c0_20] : memref<1x4xf32, #tpu.memory_space<vmem>>, vector<1x4xf32>
    %32 = vector.broadcast %31 : vector<1x4xf32> to vector<2x4xf32>
    %33 = arith.addf %30, %32 : vector<2x4xf32>
    %34 = tpu.iota {dimensions = array<i32: 1>} : vector<2x4xi32>
    %c2_i32 = arith.constant 2 : i32
    %35 = vector.broadcast %c2_i32 : i32 to vector<2x4xi32>
    %36 = arith.cmpi slt, %34, %35 : vector<2x4xi32>
    %37 = math.tanh %33 : vector<2x4xf32>
    %cst_21 = arith.constant 0.000000e+00 : f32
    %38 = vector.broadcast %cst_21 : f32 to vector<2x4xf32>
    %39 = arith.maximumf %33, %38 : vector<2x4xf32>
    %40 = vector.broadcast %cst_21 : f32 to vector<2x4xf32>
    %41 = arith.subf %33, %40 : vector<2x4xf32>
    %42 = arith.cmpf one, %41, %41 : vector<2x4xf32>
    %43 = vector.broadcast %cst_21 : f32 to vector<2x4xf32>
    %44 = arith.addf %33, %43 : vector<2x4xf32>
    %45 = math.absf %41 : vector<2x4xf32>
    %cst_22 = arith.constant 0.000000e+00 : f32
    %46 = vector.broadcast %cst_22 : f32 to vector<2x4xf32>
    %47 = arith.subf %46, %45 : vector<2x4xf32>
    %48 = math.exp %47 : vector<2x4xf32>
    %49 = math.log1p %48 : vector<2x4xf32>
    %50 = arith.addf %39, %49 : vector<2x4xf32>
    %51 = arith.select %42, %44, %50 : vector<2x4xi1>, vector<2x4xf32>
    %cst_23 = arith.constant 9.99999997E-7 : f32
    %52 = vector.broadcast %cst_23 : f32 to vector<2x4xf32>
    %53 = arith.addf %51, %52 : vector<2x4xf32>
    %54 = arith.select %36, %37, %53 : vector<2x4xi1>, vector<2x4xf32>
    %c0_24 = arith.constant 0 : index
    %c0_25 = arith.constant 0 : index
    %55 = vector.load %arg10[%c0_24, %c0_25] : memref<2x4xf32, #tpu.memory_space<vmem>>, vector<2x4xf32>
    tpu.vector_store %arg10[%c0_24, %c0_25], %54 {strides = array<i32>} : memref<2x4xf32, #tpu.memory_space<vmem>>, vector<2x4xf32>,
    return
  }
  func.func @transform_0(%arg0: i32) -> (i32, i32) {
    %c0_i32 = arith.constant 0 : i32
    %c0_i32_0 = arith.constant 0 : i32
    %c0_i32_1 = arith.constant 0 : i32
    return %c0_i32, %c0_i32_0 : i32, i32
  }
  func.func @transform_1(%arg0: i32) -> (i32, i32) {
    %c0_i32 = arith.constant 0 : i32
    %c0_i32_0 = arith.constant 0 : i32
    %c0_i32_1 = arith.constant 0 : i32
    return %c0_i32, %c0_i32_0 : i32, i32
  }
  func.func @transform_2(%arg0: i32) -> (i32, i32) {
    %c0_i32 = arith.constant 0 : i32
    %c0_i32_0 = arith.constant 0 : i32
    %c0_i32_1 = arith.constant 0 : i32
    return %c0_i32, %c0_i32_0 : i32, i32
  }
  func.func @transform_3(%arg0: i32) -> (i32, i32) {
    %c0_i32 = arith.constant 0 : i32
    %c0_i32_0 = arith.constant 0 : i32
    %c0_i32_1 = arith.constant 0 : i32
    return %c0_i32, %c0_i32_0 : i32, i32
  }
  func.func @transform_4(%arg0: i32) -> (i32, i32) {
    %c0_i32 = arith.constant 0 : i32
    %c0_i32_0 = arith.constant 0 : i32
    %c0_i32_1 = arith.constant 0 : i32
    return %c0_i32, %c0_i32_0 : i32, i32
  }
  func.func @transform_5(%arg0: i32) -> (i32, i32) {
    %c0_i32 = arith.constant 0 : i32
    %c0_i32_0 = arith.constant 0 : i32
    %c0_i32_1 = arith.constant 0 : i32
    return %c0_i32, %c0_i32_0 : i32, i32
  }
  func.func @transform_6(%arg0: i32) -> (i32, i32) {
    %c0_i32 = arith.constant 0 : i32
    %c0_i32_0 = arith.constant 0 : i32
    %c0_i32_1 = arith.constant 0 : i32
    return %c0_i32, %c0_i32_0 : i32, i32
  }
  func.func @transform_7(%arg0: i32) -> (i32, i32) {
    %c0_i32 = arith.constant 0 : i32
    %c0_i32_0 = arith.constant 0 : i32
    %c0_i32_1 = arith.constant 0 : i32
    return %c0_i32, %c0_i32_0 : i32, i32
  }
  func.func @transform_8(%arg0: i32) -> (i32, i32) {
    %c0_i32 = arith.constant 0 : i32
    %c0_i32_0 = arith.constant 0 : i32
    %c0_i32_1 = arith.constant 0 : i32
    return %c0_i32, %c0_i32_0 : i32, i32
  }
  func.func @transform_9(%arg0: i32) -> (i32, i32) {
    %c0_i32 = arith.constant 0 : i32
    %c0_i32_0 = arith.constant 0 : i32
    %c0_i32_1 = arith.constant 0 : i32
    return %c0_i32, %c0_i32_0 : i32, i32
  }
}

</mosaic_0001>

<bundles_post_ra>
// kernel: ppo_forward.5
= control target key start
LH: loop header
LB: loop body
LE: loop exit
PB: predicated region body
PF: predicated region fallthrough
CT: control target
= control target key end

     0   :  { %v500_v6 = vmov 0   ;;  %s653_s1 = inlined_call_operand.vmem [shape: bf16[384,128], index: 1, kind: input, shape index: {}]   ;;  %s654_s2 = inlined_call_operand.vmem [shape: f32[32,1], index: 2, kind: input, shape index: {}]   ;;  %s655_s0 = inlined_call_operand.vmem [shape: bf16[32,384], index: 0, kind: input, shape index: {}]   ;;  %s656_s3 = inlined_call_operand.vmem [shape: f32[32,128], index: 3, kind: output, shape index: {}]  }
   0x1   :  { %v472_v0 = vld [vmem:[%s653_s1 + $0x38] sm:$0xff]  ;;  %v471_v3 = vld [vmem:[%s653_s1 + $0x30] sm:$0xff]  ;;  %498 = vset.pattern.permute.xlu0 %v500_v6  ;;  %499 = vset.pattern.permute.xlu1 %v500_v6  ;;  %v470_v7 = vld [vmem:[%s653_s1 + $0x28] sm:$0xff] }
   0x2   :  { %v480_v1 = vld [vmem:[%s653_s1 + $0x78] sm:$0xff]  ;;  %270 = vmatpush.bf16.msra.mxu0 %v472_v0  ;;  %v479_v4 = vld [vmem:[%s653_s1 + $0x70] sm:$0xff]  ;;  %489 = vmatpush.bf16.msra.mxu3 %v472_v0  ;;  %v478_v8 = vld [vmem:[%s653_s1 + $0x68] sm:$0xff] }
   0x3   :  { %v488_v2 = vld [vmem:[%s653_s1 + $0xb8] sm:$0xff]  ;;  %289 = vmatpush.bf16.msra.mxu1 %v480_v1  ;;  %v487_v5 = vld [vmem:[%s653_s1 + $0xb0] sm:$0xff]  ;;  %v486_v9 = vld [vmem:[%s653_s1 + $0xa8] sm:$0xff] }
   0x4   :  { %308 = vmatpush.bf16.msra.mxu2 %v488_v2  ;;  %v469_v10 = vld [vmem:[%s653_s1 + $0x20] sm:$0xff]  ;;  %v468_v14 = vld [vmem:[%s653_s1 + $0x18] sm:$0xff]  ;;  %v467_v17 = vld [vmem:[%s653_s1 + $0x10] sm:$0xff] }
   0x5   :  { %v477_v11 = vld [vmem:[%s653_s1 + $0x60] sm:$0xff]  ;;  %v476_v15 = vld [vmem:[%s653_s1 + $0x58] sm:$0xff]  ;;  %v475_v18 = vld [vmem:[%s653_s1 + $0x50] sm:$0xff] }
   0x6   :  { %271 = vmatpush.bf16.msra.mxu0 %v471_v3  ;;  %490 = vmatpush.bf16.msra.mxu3 %v471_v3  ;;  %v70_v12 = vld [vmem:[%s654_s2] sm:$0xff]  ;;  %v484_v16 = vld [vmem:[%s653_s1 + $0x98] sm:$0xff]  ;;  %v71_v19 = vld [vmem:[%s654_s2 + $0x8] sm:$0xff] }
   0x7   :  { %290 = vmatpush.bf16.msra.mxu1 %v479_v4  ;;  %v485_v13 = vld [vmem:[%s653_s1 + $0xa0] sm:$0xff]  ;;  %76 = vperm.xlu0 %498, %v70_v12   ;;  %v72_v20 = vld [vmem:[%s654_s2 + $0x10] sm:$0xff]  ;;  %v466_v22 = vld [vmem:[%s653_s1 + $0x8] sm:$0xff] }
   0x8   :  { %309 = vmatpush.bf16.msra.mxu2 %v487_v5  ;;  %v483_v21 = vld [vmem:[%s653_s1 + $0x90] sm:$0xff]  ;;  %86 = vperm.xlu1 %499, %v72_v20   ;;  %v474_v23 = vld [vmem:[%s653_s1 + $0x48] sm:$0xff]  ;;  %v465_v25 = vld [vmem:[%s653_s1] sm:$0xff] }
   0x9   :  { %v482_v24 = vld [vmem:[%s653_s1 + $0x88] sm:$0xff]  ;;  %v473_v26 = vld [vmem:[%s653_s1 + $0x40] sm:$0xff]  ;;  %v73_v30 = vld [vmem:[%s654_s2 + $0x18] sm:$0xff] }
   0xa   :  { %272 = vmatpush.bf16.msra.mxu0 %v470_v7  ;;  %491 = vmatpush.bf16.msra.mxu3 %v470_v7  ;;  %v481_v27 = vld [vmem:[%s653_s1 + $0x80] sm:$0xff]  ;;  %v460_v29 = vld [vmem:[%s655_s0 + $0x8] sm:$0xf0]  ;;  %v343_v32 = vld [vmem:[%s655_s0 + $0xc] sm:$0xf0] }
   0xb   :  { %291 = vmatpush.bf16.msra.mxu1 %v478_v8  ;;  %v341_v28 = vld [vmem:[%s655_s0] sm:$0xf]  ;;  %v459_v31 = vld [vmem:[%s655_s0 + $0x4] sm:$0xf]  ;;  %v349_v33 = vld [vmem:[%s655_s0 + $0x8] sm:$0xf] }
   0xc   :  { %310 = vmatpush.bf16.msra.mxu2 %v486_v9  ;;  %v461_v34 = vld [vmem:[%s655_s0 + $0x10] sm:$0xf0]  ;;  %v353_v35 = vld [vmem:[%s655_s0 + $0x18] sm:$0xf]  ;;  %v463_v36 = vld [vmem:[%s655_s0 + $0x20] sm:$0xf0]  ;;  %v342_v37 = vor.u32 %v460_v29, %v341_v28  ;;  %v346_v38 = vor.u32 %v459_v31, %v343_v32 }
   0xd   :  { %v350_v39 = vor.u32 %v461_v34, %v349_v33  ;;  %v354_v40 = vor.u32 %v463_v36, %v353_v35  ;;  %v462_v41 = vld [vmem:[%s655_s0 + $0x1c] sm:$0xf]  ;;  %v355_v42 = vld [vmem:[%s655_s0 + $0x24] sm:$0xf0]  ;;  %v361_v43 = vld [vmem:[%s655_s0 + $0x20] sm:$0xf] }
   0xe   :  { %273 = vmatpush.bf16.msra.mxu0 %v469_v10  ;;  %492 = vmatpush.bf16.msra.mxu3 %v469_v10  ;;  %v464_v44 = vld [vmem:[%s655_s0 + $0x28] sm:$0xf0]  ;;  %v358_v45 = vor.u32 %v462_v41, %v355_v42 }
   0xf   :  { %292 = vmatpush.bf16.msra.mxu1 %v477_v11  ;;  %81 = vperm.xlu0 %498, %v71_v19   ;;  %v362_v46 = vor.u32 %v464_v44, %v361_v43 }
  0x10   :  { %311 = vmatpush.bf16.msra.mxu2 %v485_v13  ;;  %91 = vperm.xlu1 %499, %v73_v30  }
  0x12   :  { %274 = vmatpush.bf16.msra.mxu0 %v468_v14  ;;  %493 = vmatpush.bf16.msra.mxu3 %v468_v14 }
  0x13   :  { %293 = vmatpush.bf16.msra.mxu1 %v476_v15 }
  0x14   :  { %312 = vmatpush.bf16.msra.mxu2 %v484_v16 }
  0x16   :  { %275 = vmatpush.bf16.msra.mxu0 %v467_v17  ;;  %494 = vmatpush.bf16.msra.mxu3 %v467_v17 }
  0x17   :  { %294 = vmatpush.bf16.msra.mxu1 %v475_v18 }
  0x18   :  { %313 = vmatpush.bf16.msra.mxu2 %v483_v21 }
  0x1a   :  { %276 = vmatpush.bf16.msra.mxu0 %v466_v22  ;;  %495 = vmatpush.bf16.msra.mxu3 %v466_v22 }
  0x1b   :  { %295 = vmatpush.bf16.msra.mxu1 %v474_v23 }
  0x1c   :  { %314 = vmatpush.bf16.msra.mxu2 %v482_v24 }
  0x1e   :  { %277 = vmatpush.bf16.msra.mxu0 %v465_v25  ;;  %496 = vmatpush.bf16.msra.mxu3 %v465_v25 }
  0x1f   :  { %296 = vmatpush.bf16.msra.mxu1 %v473_v26 }
  0x20   :  { %315 = vmatpush.bf16.msra.mxu2 %v481_v27 }
  0x21   :  { %278 = vmatmul.bf16.vlgmr.msra.gmra.mxu0 %v342_v37  ;;  %283 = vmatmul.bf16.vlgmr.msra.gmra.mxu3 %v354_v40 }
  0x22   :  { %297 = vmatmul.bf16.vlgmr.msra.gmra.mxu1 %v346_v38 }
  0x23   :  { %316 = vmatmul.bf16.vlgmr.msra.gmra.mxu2 %v350_v39 }
  0x32   :  { %302 = vmatmul.bf16.gmra.mxu1 %v358_v45 }
  0x33   :  { %321 = vmatmul.bf16.gmra.mxu2 %v362_v46 }
  0x79   :  { %v77_v47 = vpop.permute.xlu0 %76 }
  0x7a   :  { %v87_v60 = vpop.permute.xlu1 %86 }
  0x81   :  { %v82_v53 = vpop.permute.xlu0 %81 }
  0x82   :  { %v92_v6 = vpop.permute.xlu1 %91 }
  0x9e   :  { %v279_v48 = vpop.f32.mrf.mxu0 }
  0x9f   :  { %v298_v49 = vpop.f32.mrf.mxu1  ;;  %v280_v50 = vadd.f32 %v279_v48, %v77_v47 }
  0xa1   :  { %v299_v51 = vadd.f32 %v298_v49, %v280_v50 }
  0xa4   :  { %v284_v61 = vpop.f32.mrf.mxu3 }
  0xa5   :  { %v285_v63 = vadd.f32 %v284_v61, %v87_v60 }
  0xa6   :  { %v317_v52 = vpop.f32.mrf.mxu2  ;;  %v281_v55 = vpop.f32.mrf.mxu0 }
  0xa7   :  { %v318_v54 = vadd.f32 %v317_v52, %v299_v51  ;;  %v300_v56 = vpop.f32.mrf.mxu1  ;;  %v282_v58 = vadd.f32 %v281_v55, %v82_v53 }
  0xa9   :  { %v327_v57 = vmax.f32 %v318_v54, 0.0  ;;  %v301_v59 = vadd.f32 %v300_v56, %v282_v58 }
  0xab   :  { %331 = vst [vmem:[%s656_s3] sm:$0xff] %v327_v57 }
  0xac   :  { %v286_v7 = vpop.f32.mrf.mxu3 }
  0xad   :  { %v287_v10 = vadd.f32 %v286_v7, %v92_v6 }
  0xae   :  { %v319_v62 = vpop.f32.mrf.mxu2 }
  0xaf   :  { %v320_v0 = vadd.f32 %v319_v62, %v301_v59  ;;  %v303_v1 = vpop.f32.mrf.mxu1 }
  0xb0   :  { %v304_v3 = vadd.f32 %v303_v1, %v285_v63 }
  0xb1   :  { %v328_v2 = vmax.f32 %v320_v0, 0.0 }
  0xb3   :  { %332 = vst [vmem:[%s656_s3 + $0x8] sm:$0xff] %v328_v2 }
  0xb6   :  { %v322_v4 = vpop.f32.mrf.mxu2 }
  0xb7   :  { %v323_v5 = vadd.f32 %v322_v4, %v304_v3  ;;  %v305_v9 = vpop.f32.mrf.mxu1 }
  0xb8   :  { %v306_v11 = vadd.f32 %v305_v9, %v287_v10 }
  0xb9   :  { %v329_v8 = vmax.f32 %v323_v5, 0.0 }
  0xbb   :  { %333 = vst [vmem:[%s656_s3 + $0x10] sm:$0xff] %v329_v8 }
  0xbe   :  { %v324_v12 = vpop.f32.mrf.mxu2 }
  0xbf   :  { %v325_v13 = vadd.f32 %v324_v12, %v306_v11 }
  0xc1   :  { %v330_v14 = vmax.f32 %v325_v13, 0.0 }
  0xc3   :  { %334 = vst [vmem:[%s656_s3 + $0x18] sm:$0xff] %v330_v14 }

// kernel: ppo_forward.6
= control target key start
LH: loop header
LB: loop body
LE: loop exit
PB: predicated region body
PF: predicated region fallthrough
CT: control target
= control target key end

     0   :  { %v795_v8 = vmov 0   ;;  %vm538_vm0 = vcmask 261120   ;;  %s1064_s1 = inlined_call_operand.vmem [shape: bf16[512,32], index: 1, kind: input, shape index: {}]   ;;  %s1065_s2 = inlined_call_operand.vmem [shape: f32[64,1], index: 2, kind: input, shape index: {}]   ;;  %s1066_s0 = inlined_call_operand.vmem [shape: bf16[64,512], index: 0, kind: input, shape index: {}]   ;;  %s1067_s3 = inlined_call_operand.vmem [shape: f32[64,32], index: 3, kind: output, shape index: {}]  }
   0x1   :  { %v766_v0 = vld [vmem:[%s1064_s1 + $0x38] sm:$0xff]  ;;  %v765_v4 = vld [vmem:[%s1064_s1 + $0x30] sm:$0xff]  ;;  %792 = vset.pattern.permute.xlu0 %v795_v8  ;;  %793 = vset.pattern.permute.xlu1 %v795_v8  ;;  %v764_v9 = vld [vmem:[%s1064_s1 + $0x28] sm:$0xff] }
   0x2   :  { %v774_v1 = vld [vmem:[%s1064_s1 + $0x78] sm:$0xff]  ;;  %414 = vmatpush.bf16.msra.mxu0 %v766_v0  ;;  %v773_v5 = vld [vmem:[%s1064_s1 + $0x70] sm:$0xff]  ;;  %794 = vset.pattern.permute.xlu2 %v795_v8  ;;  %v772_v10 = vld [vmem:[%s1064_s1 + $0x68] sm:$0xff] }
   0x3   :  { %v782_v2 = vld [vmem:[%s1064_s1 + $0xb8] sm:$0xff]  ;;  %443 = vmatpush.bf16.msra.mxu1 %v774_v1  ;;  %v781_v6 = vld [vmem:[%s1064_s1 + $0xb0] sm:$0xff]  ;;  %v780_v11 = vld [vmem:[%s1064_s1 + $0xa8] sm:$0xff] }
   0x4   :  { %v790_v3 = vld [vmem:[%s1064_s1 + $0xf8] sm:$0xff]  ;;  %472 = vmatpush.bf16.msra.mxu2 %v782_v2  ;;  %v789_v7 = vld [vmem:[%s1064_s1 + $0xf0] sm:$0xff]  ;;  %v788_v12 = vld [vmem:[%s1064_s1 + $0xe8] sm:$0xff] }
   0x5   :  { %501 = vmatpush.bf16.msra.mxu3 %v790_v3  ;;  %v763_v13 = vld [vmem:[%s1064_s1 + $0x20] sm:$0xff]  ;;  %v762_v18 = vld [vmem:[%s1064_s1 + $0x18] sm:$0xff]  ;;  %v761_v22 = vld [vmem:[%s1064_s1 + $0x10] sm:$0xff] }
   0x6   :  { %415 = vmatpush.bf16.msra.mxu0 %v765_v4  ;;  %v771_v14 = vld [vmem:[%s1064_s1 + $0x60] sm:$0xff]  ;;  %v770_v19 = vld [vmem:[%s1064_s1 + $0x58] sm:$0xff]  ;;  %v769_v23 = vld [vmem:[%s1064_s1 + $0x50] sm:$0xff] }
   0x7   :  { %444 = vmatpush.bf16.msra.mxu1 %v773_v5  ;;  %v779_v15 = vld [vmem:[%s1064_s1 + $0xa0] sm:$0xff]  ;;  %v778_v20 = vld [vmem:[%s1064_s1 + $0x98] sm:$0xff]  ;;  %v96_v24 = vld [vmem:[%s1065_s2 + $0x10] sm:$0xff] }
   0x8   :  { %473 = vmatpush.bf16.msra.mxu2 %v781_v6  ;;  %v787_v16 = vld [vmem:[%s1064_s1 + $0xe0] sm:$0xff]  ;;  %v786_v21 = vld [vmem:[%s1064_s1 + $0xd8] sm:$0xff]  ;;  %v777_v25 = vld [vmem:[%s1064_s1 + $0x90] sm:$0xff]  ;;  %114 = vperm.xlu1 %793, %v96_v24  }
   0x9   :  { %502 = vmatpush.bf16.msra.mxu3 %v789_v7  ;;  %v94_v17 = vld [vmem:[%s1065_s2] sm:$0xff]  ;;  %v785_v26 = vld [vmem:[%s1064_s1 + $0xd0] sm:$0xff]  ;;  %v95_v27 = vld [vmem:[%s1065_s2 + $0x8] sm:$0xff] }
   0xa   :  { %416 = vmatpush.bf16.msra.mxu0 %v764_v9  ;;  %104 = vperm.xlu0 %792, %v94_v17   ;;  %v760_v28 = vld [vmem:[%s1064_s1 + $0x8] sm:$0xff]  ;;  %v759_v32 = vld [vmem:[%s1064_s1] sm:$0xff]  ;;  %v745_v37 = vld [vmem:[%s1066_s0 + $0xc] sm:$0xf0] }
   0xb   :  { %445 = vmatpush.bf16.msra.mxu1 %v772_v10  ;;  %v768_v29 = vld [vmem:[%s1064_s1 + $0x48] sm:$0xff]  ;;  %v767_v33 = vld [vmem:[%s1064_s1 + $0x40] sm:$0xff]  ;;  %v555_v39 = vld [vmem:[%s1066_s0 + $0x10] sm:$0xf0] }
   0xc   :  { %474 = vmatpush.bf16.msra.mxu2 %v780_v11  ;;  %v776_v30 = vld [vmem:[%s1064_s1 + $0x88] sm:$0xff]  ;;  %v775_v34 = vld [vmem:[%s1064_s1 + $0x80] sm:$0xff]  ;;  %v746_v41 = vld [vmem:[%s1066_s0 + $0x14] sm:$0xf0] }
   0xd   :  { %503 = vmatpush.bf16.msra.mxu3 %v788_v12  ;;  %v784_v31 = vld [vmem:[%s1064_s1 + $0xc8] sm:$0xff]  ;;  %v783_v35 = vld [vmem:[%s1064_s1 + $0xc0] sm:$0xff]  ;;  %v563_v43 = vld [vmem:[%s1066_s0 + $0x18] sm:$0xf0] }
   0xe   :  { %417 = vmatpush.bf16.msra.mxu0 %v763_v13  ;;  %v553_v36 = vld [vmem:[%s1066_s0] sm:$0xf]  ;;  %v743_v38 = vld [vmem:[%s1066_s0 + $0x4] sm:$0xf]  ;;  %v561_v40 = vld [vmem:[%s1066_s0 + $0x8] sm:$0xf] }
   0xf   :  { %446 = vmatpush.bf16.msra.mxu1 %v771_v14  ;;  %v744_v42 = vld [vmem:[%s1066_s0 + $0xc] sm:$0xf]  ;;  %v554_v44 = vor.u32 %v745_v37, %v553_v36  ;;  %v558_v45 = vor.u32 %v743_v38, %v555_v39  ;;  %v562_v46 = vor.u32 %v746_v41, %v561_v40  ;;  %v97_v48 = vld [vmem:[%s1065_s2 + $0x18] sm:$0xff]  ;;  %v569_v49 = vld [vmem:[%s1066_s0 + $0x20] sm:$0xf] }
  0x10   :  { %475 = vmatpush.bf16.msra.mxu2 %v779_v15  ;;  %v566_v47 = vor.u32 %v744_v42, %v563_v43  ;;  %119 = vperm.xlu1 %793, %v97_v48   ;;  %v749_v50 = vld [vmem:[%s1066_s0 + $0x2c] sm:$0xf0]  ;;  %v747_v51 = vld [vmem:[%s1066_s0 + $0x24] sm:$0xf]  ;;  %v571_v52 = vld [vmem:[%s1066_s0 + $0x30] sm:$0xf0] }
  0x11   :  { %504 = vmatpush.bf16.msra.mxu3 %v787_v16  ;;  %v577_v53 = vld [vmem:[%s1066_s0 + $0x28] sm:$0xf]  ;;  %v750_v54 = vld [vmem:[%s1066_s0 + $0x34] sm:$0xf0]  ;;  %v748_v55 = vld [vmem:[%s1066_s0 + $0x2c] sm:$0xf]  ;;  %v570_v57 = vor.u32 %v749_v50, %v569_v49  ;;  %v574_v58 = vor.u32 %v747_v51, %v571_v52 }
  0x12   :  { %418 = vmatpush.bf16.msra.mxu0 %v762_v18  ;;  %109 = vperm.xlu0 %792, %v95_v27   ;;  %v579_v56 = vld [vmem:[%s1066_s0 + $0x38] sm:$0xf0]  ;;  %v578_v59 = vor.u32 %v750_v54, %v577_v53  ;;  %v100_v62 = vld [vmem:[%s1065_s2 + $0x30] sm:$0xff]  ;;  %v98_v63 = vld [vmem:[%s1065_s2 + $0x20] sm:$0xff] }
  0x13   :  { %447 = vmatpush.bf16.msra.mxu1 %v770_v19  ;;  %v582_v60 = vor.u32 %v748_v55, %v579_v56  ;;  %v101_v61 = vld [vmem:[%s1065_s2 + $0x38] sm:$0xff]  ;;  %124 = vperm.xlu2 %794, %v98_v63   ;;  %v585_v0 = vld [vmem:[%s1066_s0 + $0x40] sm:$0xf]  ;;  %v753_v1 = vld [vmem:[%s1066_s0 + $0x4c] sm:$0xf0] }
  0x14   :  { %476 = vmatpush.bf16.msra.mxu2 %v778_v20  ;;  %v99_v2 = vld [vmem:[%s1065_s2 + $0x28] sm:$0xff]  ;;  %v751_v3 = vld [vmem:[%s1066_s0 + $0x44] sm:$0xf]  ;;  %v587_v4 = vld [vmem:[%s1066_s0 + $0x50] sm:$0xf0]  ;;  %v586_v9 = vor.u32 %v753_v1, %v585_v0 }
  0x15   :  { %505 = vmatpush.bf16.msra.mxu3 %v786_v21  ;;  %v593_v5 = vld [vmem:[%s1066_s0 + $0x48] sm:$0xf]  ;;  %v754_v6 = vld [vmem:[%s1066_s0 + $0x54] sm:$0xf0]  ;;  %v752_v7 = vld [vmem:[%s1066_s0 + $0x4c] sm:$0xf]  ;;  %v590_v10 = vor.u32 %v751_v3, %v587_v4 }
  0x16   :  { %419 = vmatpush.bf16.msra.mxu0 %v761_v22  ;;  %v595_v8 = vld [vmem:[%s1066_s0 + $0x58] sm:$0xf0]  ;;  %v594_v11 = vor.u32 %v754_v6, %v593_v5  ;;  %v601_v13 = vld [vmem:[%s1066_s0 + $0x60] sm:$0xf]  ;;  %v757_v14 = vld [vmem:[%s1066_s0 + $0x6c] sm:$0xf0] }
  0x17   :  { %448 = vmatpush.bf16.msra.mxu1 %v769_v23  ;;  %v598_v12 = vor.u32 %v752_v7, %v595_v8  ;;  %v755_v15 = vld [vmem:[%s1066_s0 + $0x64] sm:$0xf]  ;;  %v603_v16 = vld [vmem:[%s1066_s0 + $0x70] sm:$0xf0]  ;;  %v609_v17 = vld [vmem:[%s1066_s0 + $0x68] sm:$0xf]  ;;  %v602_v21 = vor.u32 %v757_v14, %v601_v13 }
  0x18   :  { %477 = vmatpush.bf16.msra.mxu2 %v777_v25  ;;  %139 = vperm.xlu1 %793, %v101_v61   ;;  %v758_v18 = vld [vmem:[%s1066_s0 + $0x74] sm:$0xf0]  ;;  %v756_v19 = vld [vmem:[%s1066_s0 + $0x6c] sm:$0xf]  ;;  %v611_v20 = vld [vmem:[%s1066_s0 + $0x78] sm:$0xf0]  ;;  %v606_v22 = vor.u32 %v755_v15, %v603_v16 }
  0x19   :  { %506 = vmatpush.bf16.msra.mxu3 %v785_v26  ;;  %v610_v23 = vor.u32 %v758_v18, %v609_v17  ;;  %v614_v24 = vor.u32 %v756_v19, %v611_v20 }
  0x1a   :  { %420 = vmatpush.bf16.msra.mxu0 %v760_v28  ;;  %134 = vperm.xlu0 %792, %v100_v62  }
  0x1b   :  { %449 = vmatpush.bf16.msra.mxu1 %v768_v29  ;;  %129 = vperm.xlu2 %794, %v99_v2  }
  0x1c   :  { %478 = vmatpush.bf16.msra.mxu2 %v776_v30 }
  0x1d   :  { %507 = vmatpush.bf16.msra.mxu3 %v784_v31 }
  0x1e   :  { %421 = vmatpush.bf16.msra.mxu0 %v759_v32 }
  0x1f   :  { %450 = vmatpush.bf16.msra.mxu1 %v767_v33 }
  0x20   :  { %479 = vmatpush.bf16.msra.mxu2 %v775_v34 }
  0x21   :  { %508 = vmatpush.bf16.msra.mxu3 %v783_v35  ;;  %422 = vmatmul.bf16.vlgmr.msra.gmra.mxu0 %v554_v44 }
  0x22   :  { %451 = vmatmul.bf16.vlgmr.msra.gmra.mxu1 %v558_v45 }
  0x23   :  { %480 = vmatmul.bf16.vlgmr.msra.gmra.mxu2 %v562_v46 }
  0x24   :  { %509 = vmatmul.bf16.vlgmr.msra.gmra.mxu3 %v566_v47 }
  0x31   :  { %427 = vmatmul.bf16.gmra.mxu0 %v570_v57 }
  0x32   :  { %456 = vmatmul.bf16.gmra.mxu1 %v574_v58 }
  0x33   :  { %485 = vmatmul.bf16.gmra.mxu2 %v578_v59 }
  0x34   :  { %514 = vmatmul.bf16.gmra.mxu3 %v582_v60 }
  0x41   :  { %432 = vmatmul.bf16.gmra.mxu0 %v586_v9 }
  0x42   :  { %461 = vmatmul.bf16.gmra.mxu1 %v590_v10 }
  0x43   :  { %490 = vmatmul.bf16.gmra.mxu2 %v594_v11 }
  0x44   :  { %519 = vmatmul.bf16.gmra.mxu3 %v598_v12 }
  0x51   :  { %437 = vmatmul.bf16.gmra.mxu0 %v602_v21 }
  0x52   :  { %466 = vmatmul.bf16.gmra.mxu1 %v606_v22 }
  0x53   :  { %495 = vmatmul.bf16.gmra.mxu2 %v610_v23 }
  0x54   :  { %524 = vmatmul.bf16.gmra.mxu3 %v614_v24 }
  0x6d   :  { %v125_v59 = vpop.permute.xlu2 %124 }
  0x75   :  { %v130_v6 = vpop.permute.xlu2 %129 }
  0x7a   :  { %v115_v39 = vpop.permute.xlu1 %114 }
  0x7c   :  { %v105_v25 = vpop.permute.xlu0 %104 }
  0x82   :  { %v120_v50 = vpop.permute.xlu1 %119 }
  0x84   :  { %v110_v30 = vpop.permute.xlu0 %109 }
  0x8c   :  { %v135_v20 = vpop.permute.xlu0 %134 }
  0x9e   :  { %v423_v26 = vpop.f32.mrf.mxu0 }
  0x9f   :  { %v452_v27 = vpop.f32.mrf.mxu1  ;;  %v424_v28 = vadd.f32 %v423_v26, %v105_v25 }
  0xa1   :  { %v453_v29 = vadd.f32 %v452_v27, %v424_v28 }
  0xa6   :  { %v481_v31 = vpop.f32.mrf.mxu2  ;;  %v425_v34 = vpop.f32.mrf.mxu0 }
  0xa7   :  { %v510_v32 = vpop.f32.mrf.mxu3  ;;  %v482_v33 = vadd.f32 %v481_v31, %v453_v29  ;;  %v454_v35 = vpop.f32.mrf.mxu1  ;;  %v426_v37 = vadd.f32 %v425_v34, %v110_v30 }
  0xa8   :  { %v140_v30 = vpop.permute.xlu1 %139 }
  0xa9   :  { %v511_v36 = vadd.f32 %v510_v32, %v482_v33  ;;  %v455_v40 = vadd.f32 %v454_v35, %v426_v37 }
  0xab   :  { %v530_v38 = vmax.f32 %v511_v36, 0.0 }
  0xad   :  { %539 = vst.msk [vmem:[%s1067_s3] sm:$0xff] %vm538_vm0, %v530_v38 }
  0xae   :  { %v483_v41 = vpop.f32.mrf.mxu2  ;;  %v428_v44 = vpop.f32.mrf.mxu0 }
  0xaf   :  { %v512_v42 = vpop.f32.mrf.mxu3  ;;  %v484_v43 = vadd.f32 %v483_v41, %v455_v40  ;;  %v457_v45 = vpop.f32.mrf.mxu1  ;;  %v429_v46 = vadd.f32 %v428_v44, %v115_v39 }
  0xb1   :  { %v513_v47 = vadd.f32 %v512_v42, %v484_v43  ;;  %v458_v49 = vadd.f32 %v457_v45, %v429_v46 }
  0xb3   :  { %v531_v48 = vmax.f32 %v513_v47, 0.0 }
  0xb5   :  { %540 = vst.msk [vmem:[%s1067_s3 + $0x8] sm:$0xff] %vm538_vm0, %v531_v48 }
  0xb6   :  { %v486_v51 = vpop.f32.mrf.mxu2  ;;  %v430_v54 = vpop.f32.mrf.mxu0 }
  0xb7   :  { %v515_v52 = vpop.f32.mrf.mxu3  ;;  %v487_v53 = vadd.f32 %v486_v51, %v458_v49  ;;  %v459_v55 = vpop.f32.mrf.mxu1  ;;  %v431_v57 = vadd.f32 %v430_v54, %v120_v50 }
  0xb9   :  { %v516_v56 = vadd.f32 %v515_v52, %v487_v53  ;;  %v460_v60 = vadd.f32 %v459_v55, %v431_v57 }
  0xbb   :  { %v532_v58 = vmax.f32 %v516_v56, 0.0 }
  0xbd   :  { %541 = vst.msk [vmem:[%s1067_s3 + $0x10] sm:$0xff] %vm538_vm0, %v532_v58 }
  0xbe   :  { %v488_v61 = vpop.f32.mrf.mxu2  ;;  %v433_v0 = vpop.f32.mrf.mxu0 }
  0xbf   :  { %v517_v62 = vpop.f32.mrf.mxu3  ;;  %v489_v63 = vadd.f32 %v488_v61, %v460_v60  ;;  %v462_v1 = vpop.f32.mrf.mxu1  ;;  %v434_v2 = vadd.f32 %v433_v0, %v125_v59 }
  0xc1   :  { %v518_v3 = vadd.f32 %v517_v62, %v489_v63  ;;  %v463_v5 = vadd.f32 %v462_v1, %v434_v2 }
  0xc3   :  { %v533_v4 = vmax.f32 %v518_v3, 0.0 }
  0xc5   :  { %542 = vst.msk [vmem:[%s1067_s3 + $0x18] sm:$0xff] %vm538_vm0, %v533_v4 }
  0xc6   :  { %v491_v7 = vpop.f32.mrf.mxu2  ;;  %v435_v10 = vpop.f32.mrf.mxu0 }
  0xc7   :  { %v520_v8 = vpop.f32.mrf.mxu3  ;;  %v492_v9 = vadd.f32 %v491_v7, %v463_v5  ;;  %v464_v11 = vpop.f32.mrf.mxu1  ;;  %v436_v13 = vadd.f32 %v435_v10, %v130_v6 }
  0xc9   :  { %v521_v12 = vadd.f32 %v520_v8, %v492_v9  ;;  %v465_v15 = vadd.f32 %v464_v11, %v436_v13 }
  0xcb   :  { %v534_v14 = vmax.f32 %v521_v12, 0.0 }
  0xcd   :  { %543 = vst.msk [vmem:[%s1067_s3 + $0x20] sm:$0xff] %vm538_vm0, %v534_v14 }
  0xce   :  { %v493_v16 = vpop.f32.mrf.mxu2  ;;  %v438_v19 = vpop.f32.mrf.mxu0 }
  0xcf   :  { %v522_v17 = vpop.f32.mrf.mxu3  ;;  %v494_v18 = vadd.f32 %v493_v16, %v465_v15  ;;  %v439_v22 = vadd.f32 %v438_v19, %v135_v20  ;;  %v467_v23 = vpop.f32.mrf.mxu1 }
  0xd1   :  { %v523_v21 = vadd.f32 %v522_v17, %v494_v18  ;;  %v468_v25 = vadd.f32 %v467_v23, %v439_v22 }
  0xd3   :  { %v535_v24 = vmax.f32 %v523_v21, 0.0 }
  0xd5   :  { %544 = vst.msk [vmem:[%s1067_s3 + $0x28] sm:$0xff] %vm538_vm0, %v535_v24 }
  0xd6   :  { %v496_v26 = vpop.f32.mrf.mxu2  ;;  %v440_v29 = vpop.f32.mrf.mxu0 }
  0xd7   :  { %v525_v27 = vpop.f32.mrf.mxu3  ;;  %v497_v28 = vadd.f32 %v496_v26, %v468_v25  ;;  %v441_v32 = vadd.f32 %v440_v29, %v140_v30  ;;  %v469_v34 = vpop.f32.mrf.mxu1 }
  0xd9   :  { %v526_v31 = vadd.f32 %v525_v27, %v497_v28  ;;  %v470_v35 = vadd.f32 %v469_v34, %v441_v32 }
  0xdb   :  { %v536_v33 = vmax.f32 %v526_v31, 0.0 }
  0xdd   :  { %545 = vst.msk [vmem:[%s1067_s3 + $0x30] sm:$0xff] %vm538_vm0, %v536_v33 }
  0xde   :  { %v498_v36 = vpop.f32.mrf.mxu2 }
  0xdf   :  { %v499_v37 = vadd.f32 %v498_v36, %v470_v35  ;;  %v527_v38 = vpop.f32.mrf.mxu3 }
  0xe1   :  { %v528_v39 = vadd.f32 %v527_v38, %v499_v37 }
  0xe3   :  { %v537_v40 = vmax.f32 %v528_v39, 0.0 }
  0xe5   :  { %546 = vst.msk [vmem:[%s1067_s3 + $0x38] sm:$0xff] %vm538_vm0, %v537_v40 }

// kernel: ppo_forward.7
= control target key start
LH: loop header
LB: loop body
LE: loop exit
PB: predicated region body
PF: predicated region fallthrough
CT: control target
= control target key end

     0   :  { %v958_v6 = vmov 0   ;;  %vm475_vm0 = vcmask 523264   ;;  %vm641_vm1 = vcmask 261120   ;;  %s1273_s1 = inlined_call_operand.vmem [shape: bf16[576,32], index: 1, kind: input, shape index: {}]   ;;  %s1274_s2 = inlined_call_operand.vmem [shape: f32[64,1], index: 2, kind: input, shape index: {}]   ;;  %s1275_s0 = inlined_call_operand.vmem [shape: bf16[64,576], index: 0, kind: input, shape index: {}]   ;;  %s1276_s3 = inlined_call_operand.vmem [shape: f32[64,32], index: 3, kind: output, shape index: {}]  }
   0x1   :  { %v909_v0 = vld [vmem:[%s1273_s1 + $0x38] sm:$0xff]  ;;  %v908_v1 = vld [vmem:[%s1273_s1 + $0x30] sm:$0xff]  ;;  %v907_v4 = vld [vmem:[%s1273_s1 + $0x28] sm:$0xff]  ;;  %956 = vset.pattern.permute.xlu1 %v958_v6  ;;  %955 = vset.pattern.permute.xlu0 %v958_v6 }
   0x2   :  { %938 = vmatpush.bf16.msra.mxu1 %v909_v0  ;;  %939 = vmatpush.bf16.msra.mxu2 %v909_v0  ;;  %v933_v2 = vld [vmem:[%s1273_s1 + $0xf8] sm:$0xff]  ;;  %v932_v3 = vld [vmem:[%s1273_s1 + $0xf0] sm:$0xff]  ;;  %v931_v5 = vld [vmem:[%s1273_s1 + $0xe8] sm:$0xff] }
   0x3   :  { %488 = vmatpush.bf16.msra.mxu0 %v909_v0  ;;  %575 = vmatpush.bf16.msra.mxu3 %v933_v2  ;;  %v906_v7 = vld [vmem:[%s1273_s1 + $0x20] sm:$0xff]  ;;  %v113_v8 = vld [vmem:[%s1274_s2 + $0x10] sm:$0xff]  ;;  %v905_v11 = vld [vmem:[%s1273_s1 + $0x18] sm:$0xff] }
   0x4   :  { %957 = vset.pattern.permute.xlu2 %v958_v6  ;;  %v930_v9 = vld [vmem:[%s1273_s1 + $0xe0] sm:$0xff]  ;;  %131 = vperm.xlu1 %956, %v113_v8   ;;  %v929_v12 = vld [vmem:[%s1273_s1 + $0xd8] sm:$0xff]  ;;  %v904_v13 = vld [vmem:[%s1273_s1 + $0x10] sm:$0xff] }
   0x5   :  { %v111_v10 = vld [vmem:[%s1274_s2] sm:$0xff]  ;;  %v114_v14 = vld [vmem:[%s1274_s2 + $0x18] sm:$0xff]  ;;  %v928_v15 = vld [vmem:[%s1273_s1 + $0xd0] sm:$0xff] }
   0x6   :  { %940 = vmatpush.bf16.msra.mxu1 %v908_v1  ;;  %941 = vmatpush.bf16.msra.mxu2 %v908_v1  ;;  %v112_v16 = vld [vmem:[%s1274_s2 + $0x8] sm:$0xff]  ;;  %v902_v19 = vld [vmem:[%s1273_s1] sm:$0xff]  ;;  %v889_v21 = vld [vmem:[%s1275_s0 + $0x38] sm:$0xf0] }
   0x7   :  { %489 = vmatpush.bf16.msra.mxu0 %v908_v1  ;;  %576 = vmatpush.bf16.msra.mxu3 %v932_v3  ;;  %v903_v17 = vld [vmem:[%s1273_s1 + $0x8] sm:$0xff]  ;;  %v716_v22 = vld [vmem:[%s1275_s0 + $0x78] sm:$0xf]  ;;  %v656_v26 = vld [vmem:[%s1275_s0] sm:$0xf] }
   0x8   :  { %121 = vperm.xlu0 %955, %v111_v10   ;;  %v927_v18 = vld [vmem:[%s1273_s1 + $0xc8] sm:$0xff]  ;;  %v925_v24 = vld [vmem:[%s1273_s1 + $0xb8] sm:$0xff]  ;;  %v926_v27 = vld [vmem:[%s1273_s1 + $0xc0] sm:$0xff] }
   0x9   :  { %v676_v20 = vld [vmem:[%s1275_s0 + $0x28] sm:$0xf]  ;;  %v899_v23 = vld [vmem:[%s1275_s0 + $0x88] sm:$0xf0]  ;;  %v917_v25 = vld [vmem:[%s1273_s1 + $0x78] sm:$0xff] }
   0xa   :  { %942 = vmatpush.bf16.msra.mxu1 %v907_v4  ;;  %943 = vmatpush.bf16.msra.mxu2 %v907_v4  ;;  %v677_v28 = vor.u32 %v889_v21, %v676_v20  ;;  %v717_v29 = vor.u32 %v899_v23, %v716_v22  ;;  %v884_v30 = vld [vmem:[%s1275_s0 + $0x10] sm:$0xf0]  ;;  %v883_v31 = vld [vmem:[%s1275_s0 + $0xc] sm:$0xf]  ;;  %v666_v32 = vld [vmem:[%s1275_s0 + $0x1c] sm:$0xf0] }
   0xb   :  { %490 = vmatpush.bf16.msra.mxu0 %v907_v4  ;;  %577 = vmatpush.bf16.msra.mxu3 %v931_v5  ;;  %v937_v33 = vld [vmem:[%s1273_s1 + $0x118] sm:$0xff]  ;;  %v924_v34 = vld [vmem:[%s1273_s1 + $0xb0] sm:$0xff]  ;;  %v657_v37 = vor.u32 %v884_v30, %v656_v26  ;;  %v669_v38 = vor.u32 %v883_v31, %v666_v32  ;;  %v923_v41 = vld [vmem:[%s1273_s1 + $0xa8] sm:$0xff] }
   0xc   :  { %136 = vperm.xlu1 %956, %v114_v14   ;;  %v916_v35 = vld [vmem:[%s1273_s1 + $0x70] sm:$0xff]  ;;  %v118_v36 = vld [vmem:[%s1274_s2 + $0x38] sm:$0xff]  ;;  %v915_v42 = vld [vmem:[%s1273_s1 + $0x68] sm:$0xff] }
   0xd   :  { %v936_v39 = vld [vmem:[%s1273_s1 + $0x110] sm:$0xff]  ;;  %v935_v43 = vld [vmem:[%s1273_s1 + $0x108] sm:$0xff]  ;;  %v922_v44 = vld [vmem:[%s1273_s1 + $0xa0] sm:$0xff] }
   0xe   :  { %944 = vmatpush.bf16.msra.mxu1 %v906_v7  ;;  %945 = vmatpush.bf16.msra.mxu2 %v906_v7  ;;  %v117_v40 = vld [vmem:[%s1274_s2 + $0x30] sm:$0xff]  ;;  %v914_v45 = vld [vmem:[%s1273_s1 + $0x60] sm:$0xff]  ;;  %v921_v49 = vld [vmem:[%s1273_s1 + $0x98] sm:$0xff] }
   0xf   :  { %491 = vmatpush.bf16.msra.mxu0 %v906_v7  ;;  %578 = vmatpush.bf16.msra.mxu3 %v930_v9  ;;  %v696_v46 = vld [vmem:[%s1275_s0 + $0x50] sm:$0xf]  ;;  %v894_v47 = vld [vmem:[%s1275_s0 + $0x60] sm:$0xf0]  ;;  %v913_v50 = vld [vmem:[%s1273_s1 + $0x58] sm:$0xff] }
  0x10   :  { %126 = vperm.xlu0 %955, %v112_v16   ;;  %v934_v48 = vld [vmem:[%s1273_s1 + $0x100] sm:$0xff]  ;;  %v672_v51 = vld [vmem:[%s1275_s0 + $0x10] sm:$0xf]  ;;  %v697_v52 = vor.u32 %v894_v47, %v696_v46  ;;  %v888_v54 = vld [vmem:[%s1275_s0 + $0x34] sm:$0xf] }
  0x11   :  { %v886_v53 = vld [vmem:[%s1275_s0 + $0x20] sm:$0xf0]  ;;  %v686_v55 = vld [vmem:[%s1275_s0 + $0x44] sm:$0xf0]  ;;  %v920_v56 = vld [vmem:[%s1273_s1 + $0x90] sm:$0xff] }
  0x12   :  { %946 = vmatpush.bf16.msra.mxu1 %v905_v11  ;;  %947 = vmatpush.bf16.msra.mxu2 %v905_v11  ;;  %v912_v57 = vld [vmem:[%s1273_s1 + $0x50] sm:$0xff]  ;;  %v673_v58 = vor.u32 %v886_v53, %v672_v51  ;;  %v689_v59 = vor.u32 %v888_v54, %v686_v55  ;;  %v115_v60 = vld [vmem:[%s1274_s2 + $0x20] sm:$0xff]  ;;  %v919_v61 = vld [vmem:[%s1273_s1 + $0x88] sm:$0xff] }
  0x13   :  { %492 = vmatpush.bf16.msra.mxu0 %v905_v11  ;;  %579 = vmatpush.bf16.msra.mxu3 %v929_v12  ;;  %v911_v62 = vld [vmem:[%s1273_s1 + $0x48] sm:$0xff]  ;;  %v918_v63 = vld [vmem:[%s1273_s1 + $0x80] sm:$0xff]  ;;  %v885_v2 = vld [vmem:[%s1275_s0 + $0x18] sm:$0xf0] }
  0x14   :  { %156 = vperm.xlu1 %956, %v118_v36   ;;  %141 = vperm.xlu2 %957, %v115_v60   ;;  %v910_v0 = vld [vmem:[%s1273_s1 + $0x40] sm:$0xff]  ;;  %v664_v1 = vld [vmem:[%s1275_s0 + $0x8] sm:$0xf]  ;;  %v658_v6 = vld [vmem:[%s1275_s0 + $0x14] sm:$0xf0] }
  0x15   :  { %v116_v3 = vld [vmem:[%s1274_s2 + $0x28] sm:$0xff]  ;;  %v665_v4 = vor.u32 %v885_v2, %v664_v1  ;;  %v882_v5 = vld [vmem:[%s1275_s0 + $0x4] sm:$0xf]  ;;  %v692_v7 = vld [vmem:[%s1275_s0 + $0x38] sm:$0xf] }
  0x16   :  { %948 = vmatpush.bf16.msra.mxu1 %v904_v13  ;;  %949 = vmatpush.bf16.msra.mxu2 %v904_v13  ;;  %v661_v8 = vor.u32 %v882_v5, %v658_v6  ;;  %v891_v9 = vld [vmem:[%s1275_s0 + $0x48] sm:$0xf0]  ;;  %v893_v10 = vld [vmem:[%s1275_s0 + $0x5c] sm:$0xf]  ;;  %v706_v11 = vld [vmem:[%s1275_s0 + $0x6c] sm:$0xf0] }
  0x17   :  { %493 = vmatpush.bf16.msra.mxu0 %v904_v13  ;;  %580 = vmatpush.bf16.msra.mxu3 %v928_v15  ;;  %v693_v12 = vor.u32 %v891_v9, %v692_v7  ;;  %v709_v13 = vor.u32 %v893_v10, %v706_v11  ;;  %v684_v14 = vld [vmem:[%s1275_s0 + $0x30] sm:$0xf]  ;;  %v890_v15 = vld [vmem:[%s1275_s0 + $0x40] sm:$0xf0]  ;;  %v896_v21 = vld [vmem:[%s1275_s0 + $0x70] sm:$0xf0] }
  0x18   :  { %151 = vperm.xlu0 %955, %v117_v40   ;;  %v685_v16 = vor.u32 %v890_v15, %v684_v14  ;;  %v898_v22 = vld [vmem:[%s1275_s0 + $0x84] sm:$0xf]  ;;  %v726_v23 = vld [vmem:[%s1275_s0 + $0x94] sm:$0xf0]  ;;  %v698_v30 = vld [vmem:[%s1275_s0 + $0x64] sm:$0xf0] }
  0x19   :  { %v704_v26 = vld [vmem:[%s1275_s0 + $0x58] sm:$0xf]  ;;  %v732_v32 = vld [vmem:[%s1275_s0 + $0x88] sm:$0xf]  ;;  %v900_v36 = vld [vmem:[%s1275_s0 + $0x90] sm:$0xf0] }
  0x1a   :  { %950 = vmatpush.bf16.msra.mxu1 %v903_v17  ;;  %951 = vmatpush.bf16.msra.mxu2 %v903_v17 }
  0x1b   :  { %494 = vmatpush.bf16.msra.mxu0 %v903_v17  ;;  %581 = vmatpush.bf16.msra.mxu3 %v927_v18  ;;  %v887_v17 = vld [vmem:[%s1275_s0 + $0x2c] sm:$0xf]  ;;  %v678_v18 = vld [vmem:[%s1275_s0 + $0x3c] sm:$0xf0] }
  0x1c   :  { %146 = vperm.xlu2 %957, %v116_v3   ;;  %v681_v20 = vor.u32 %v887_v17, %v678_v18 }
  0x1e   :  { %952 = vmatpush.bf16.msra.mxu1 %v902_v19  ;;  %953 = vmatpush.bf16.msra.mxu2 %v902_v19 }
  0x1f   :  { %495 = vmatpush.bf16.msra.mxu0 %v902_v19  ;;  %582 = vmatpush.bf16.msra.mxu3 %v926_v27  ;;  %v712_v19 = vld [vmem:[%s1275_s0 + $0x60] sm:$0xf]  ;;  %v895_v27 = vld [vmem:[%s1275_s0 + $0x68] sm:$0xf0] }
  0x21   :  { %501 = vmatmul.bf16.vlgmr.msra.gmra.mxu1 %v677_v28  ;;  %511 = vmatmul.bf16.vlgmr.msra.gmra.mxu2 %v717_v29  ;;  %v705_v28 = vor.u32 %v895_v27, %v704_v26  ;;  %v892_v29 = vld [vmem:[%s1275_s0 + $0x54] sm:$0xf] }
  0x22   :  { %546 = vmatpush.bf16.msrb.mxu2 %v925_v24  ;;  %517 = vmatpush.bf16.msrb.mxu1 %v917_v25  ;;  %v713_v24 = vor.u32 %v896_v21, %v712_v19  ;;  %v729_v25 = vor.u32 %v898_v22, %v726_v23  ;;  %v701_v31 = vor.u32 %v892_v29, %v698_v30 }
  0x23   :  { %608 = vmatpush.bf16.msrb.mxu0 %v937_v33  ;;  %583 = vmatmul.bf16.vlgmr.msra.gmra.mxu3 %v669_v38  ;;  %v901_v33 = vld [vmem:[%s1275_s0 + $0x98] sm:$0xf0] }
  0x24   :  { %496 = vmatmul.bf16.vlgmr.msra.gmra.mxu0 %v657_v37  ;;  %v897_v38 = vld [vmem:[%s1275_s0 + $0x7c] sm:$0xf] }
  0x26   :  { %547 = vmatpush.bf16.msrb.mxu2 %v924_v34  ;;  %518 = vmatpush.bf16.msrb.mxu1 %v916_v35  ;;  %v733_v34 = vor.u32 %v901_v33, %v732_v32  ;;  %v724_v35 = vld [vmem:[%s1275_s0 + $0x80] sm:$0xf] }
  0x27   :  { %609 = vmatpush.bf16.msrb.mxu0 %v936_v39  ;;  %v725_v37 = vor.u32 %v900_v36, %v724_v35  ;;  %v718_v39 = vld [vmem:[%s1275_s0 + $0x8c] sm:$0xf0] }
  0x28   :  { %v721_v40 = vor.u32 %v897_v38, %v718_v39 }
  0x2a   :  { %548 = vmatpush.bf16.msrb.mxu2 %v923_v41  ;;  %519 = vmatpush.bf16.msrb.mxu1 %v915_v42 }
  0x2b   :  { %610 = vmatpush.bf16.msrb.mxu0 %v935_v43 }
  0x2e   :  { %549 = vmatpush.bf16.msrb.mxu2 %v922_v44  ;;  %520 = vmatpush.bf16.msrb.mxu1 %v914_v45 }
  0x2f   :  { %611 = vmatpush.bf16.msrb.mxu0 %v934_v48 }
  0x31   :  { %506 = vmatmul.bf16.gmra.mxu1 %v697_v52 }
  0x32   :  { %550 = vmatpush.bf16.msrb.mxu2 %v921_v49  ;;  %521 = vmatpush.bf16.msrb.mxu1 %v913_v50 }
  0x33   :  { %588 = vmatmul.bf16.gmra.mxu3 %v689_v59 }
  0x34   :  { %878 = vmatmul.msk.bf16.vlgmr.msrb.gmra.mxu0 %vm475_vm0, %v673_v58 }
  0x36   :  { %551 = vmatpush.bf16.msrb.mxu2 %v920_v56  ;;  %522 = vmatpush.bf16.msrb.mxu1 %v912_v57 }
  0x3a   :  { %552 = vmatpush.bf16.msrb.mxu2 %v919_v61  ;;  %523 = vmatpush.bf16.msrb.mxu1 %v911_v62 }
  0x3e   :  { %553 = vmatpush.bf16.msrb.mxu2 %v918_v63  ;;  %524 = vmatpush.bf16.msrb.mxu1 %v910_v0 }
  0x41   :  { %554 = vmatmul.bf16.vlgmr.msrb.gmra.mxu2 %v665_v4  ;;  %525 = vmatmul.bf16.vlgmr.msrb.gmra.mxu1 %v661_v8 }
  0x43   :  { %593 = vmatmul.bf16.gmra.mxu3 %v709_v13 }
  0x44   :  { %879 = vmatmul.msk.bf16.gmra.mxu0 %vm475_vm0, %v693_v12 }
  0x51   :  { %559 = vmatmul.bf16.gmra.mxu2 %v685_v16  ;;  %530 = vmatmul.bf16.gmra.mxu1 %v681_v20 }
  0x53   :  { %598 = vmatmul.bf16.gmra.mxu3 %v729_v25 }
  0x54   :  { %880 = vmatmul.msk.bf16.gmra.mxu0 %vm475_vm0, %v713_v24 }
  0x61   :  { %564 = vmatmul.bf16.gmra.mxu2 %v705_v28  ;;  %535 = vmatmul.bf16.gmra.mxu1 %v701_v31 }
  0x64   :  { %881 = vmatmul.msk.bf16.gmra.mxu0 %vm475_vm0, %v733_v34 }
  0x6e   :  { %v142_v23 = vpop.permute.xlu2 %141 }
  0x71   :  { %569 = vmatmul.bf16.gmra.mxu2 %v725_v37  ;;  %540 = vmatmul.bf16.gmra.mxu1 %v721_v40 }
  0x76   :  { %v132_v1 = vpop.permute.xlu1 %131  ;;  %v147_v36 = vpop.permute.xlu2 %146 }
  0x7a   :  { %v122_v51 = vpop.permute.xlu0 %121 }
  0x7e   :  { %v137_v14 = vpop.permute.xlu1 %136 }
  0x82   :  { %v127_v59 = vpop.permute.xlu0 %126 }
  0x9e   :  { %v502_v41 = vpop.f32.mrf.mxu1 }
  0x9f   :  { %v503_v8 = vadd.f32 %v502_v41, %v132_v1 }
  0xa1   :  { %v497_v42 = vpop.f32.mrf.mxu0 }
  0xa2   :  { %v498_v52 = vadd.f32 %v497_v42, %v122_v51 }
  0xa4   :  { %v1235_v46 = vpop.f32.mrf.mxu2 }
  0xa6   :  { %v504_v43 = vpop.f32.mrf.mxu1  ;;  %v584_v47 = vpop.f32.mrf.mxu3 }
  0xa7   :  { %v505_v18 = vadd.f32 %v504_v43, %v137_v14 }
  0xa9   :  { %v499_v44 = vpop.f32.mrf.mxu0 }
  0xaa   :  { %v500_v61 = vadd.f32 %v499_v44, %v127_v59  ;;  %v157_v59 = vpop.permute.xlu1 %156 }
  0xac   :  { %v1237_v50 = vpop.f32.mrf.mxu2 }
  0xae   :  { %v507_v45 = vpop.f32.mrf.mxu1  ;;  %v586_v55 = vpop.f32.mrf.mxu3 }
  0xaf   :  { %v508_v28 = vadd.f32 %v507_v45, %v142_v23 }
  0xb1   :  { %v613_v49 = vpop.f32.mrf.mxu0 }
  0xb6   :  { %v509_v48 = vpop.f32.mrf.mxu1  ;;  %v589_v4 = vpop.f32.mrf.mxu3 }
  0xb7   :  { %v510_v39 = vadd.f32 %v509_v48, %v147_v36 }
  0xb9   :  { %v615_v57 = vpop.f32.mrf.mxu0 }
  0xbe   :  { %v526_v53 = vpop.f32.mrf.mxu1  ;;  %v591_v16 = vpop.f32.mrf.mxu3 }
  0xbf   :  { %v527_v54 = vadd.f32 %v526_v53, %v498_v52 }
  0xc1   :  { %v618_v6 = vpop.f32.mrf.mxu0 }
  0xc4   :  { %v555_v56 = vpop.f32.mrf.mxu2 }
  0xc5   :  { %v556_v58 = vadd.f32 %v555_v56, %v527_v54 }
  0xc6   :  { %v528_v63 = vpop.f32.mrf.mxu1  ;;  %v594_v29 = vpop.f32.mrf.mxu3 }
  0xc7   :  { %v585_v60 = vadd.f32 %v584_v47, %v556_v58  ;;  %v529_v0 = vadd.f32 %v528_v63, %v500_v61  ;;  %v515_v63 = vadd.f32 %v1237_v50, %v157_v59 }
  0xc9   :  { %v614_v62 = vadd.f32 %v613_v49, %v585_v60  ;;  %v620_v19 = vpop.f32.mrf.mxu0  ;;  %v152_v49 = vpop.permute.xlu0 %151 }
  0xca   :  { %v513_v53 = vadd.f32 %v1235_v46, %v152_v49 }
  0xcb   :  { %v633_v2 = vmax.f32 %v614_v62, 0.0 }
  0xcc   :  { %v557_v3 = vpop.f32.mrf.mxu2 }
  0xcd   :  { %642 = vst.msk [vmem:[%s1276_s3] sm:$0xff] %vm641_vm1, %v633_v2  ;;  %v558_v5 = vadd.f32 %v557_v3, %v529_v0 }
  0xce   :  { %v531_v10 = vpop.f32.mrf.mxu1  ;;  %v596_v42 = vpop.f32.mrf.mxu3 }
  0xcf   :  { %v587_v7 = vadd.f32 %v586_v55, %v558_v5  ;;  %v532_v11 = vadd.f32 %v531_v10, %v503_v8 }
  0xd1   :  { %v616_v9 = vadd.f32 %v615_v57, %v587_v7  ;;  %v623_v32 = vpop.f32.mrf.mxu0 }
  0xd3   :  { %v634_v12 = vmax.f32 %v616_v9, 0.0 }
  0xd4   :  { %v560_v13 = vpop.f32.mrf.mxu2 }
  0xd5   :  { %643 = vst.msk [vmem:[%s1276_s3 + $0x8] sm:$0xff] %vm641_vm1, %v634_v12  ;;  %v561_v15 = vadd.f32 %v560_v13, %v532_v11 }
  0xd6   :  { %v533_v21 = vpop.f32.mrf.mxu1  ;;  %v599_v57 = vpop.f32.mrf.mxu3 }
  0xd7   :  { %v590_v17 = vadd.f32 %v589_v4, %v561_v15  ;;  %v534_v22 = vadd.f32 %v533_v21, %v505_v18 }
  0xd9   :  { %v619_v20 = vadd.f32 %v618_v6, %v590_v17  ;;  %v625_v45 = vpop.f32.mrf.mxu0 }
  0xdb   :  { %v635_v24 = vmax.f32 %v619_v20, 0.0 }
  0xdc   :  { %v562_v25 = vpop.f32.mrf.mxu2 }
  0xdd   :  { %644 = vst.msk [vmem:[%s1276_s3 + $0x10] sm:$0xff] %vm641_vm1, %v635_v24  ;;  %v563_v26 = vadd.f32 %v562_v25, %v534_v22 }
  0xde   :  { %v536_v31 = vpop.f32.mrf.mxu1  ;;  %v601_v5 = vpop.f32.mrf.mxu3 }
  0xdf   :  { %v592_v27 = vadd.f32 %v591_v16, %v563_v26  ;;  %v537_v33 = vadd.f32 %v536_v31, %v508_v28 }
  0xe1   :  { %v621_v30 = vadd.f32 %v620_v19, %v592_v27  ;;  %v628_v61 = vpop.f32.mrf.mxu0 }
  0xe3   :  { %v636_v34 = vmax.f32 %v621_v30, 0.0 }
  0xe4   :  { %v565_v35 = vpop.f32.mrf.mxu2 }
  0xe5   :  { %645 = vst.msk [vmem:[%s1276_s3 + $0x18] sm:$0xff] %vm641_vm1, %v636_v34  ;;  %v566_v37 = vadd.f32 %v565_v35, %v537_v33 }
  0xe6   :  { %v538_v41 = vpop.f32.mrf.mxu1 }
  0xe7   :  { %v595_v38 = vadd.f32 %v594_v29, %v566_v37  ;;  %v539_v43 = vadd.f32 %v538_v41, %v510_v39 }
  0xe9   :  { %v624_v40 = vadd.f32 %v623_v32, %v595_v38  ;;  %v630_v7 = vpop.f32.mrf.mxu0 }
  0xeb   :  { %v637_v44 = vmax.f32 %v624_v40, 0.0 }
  0xec   :  { %v567_v47 = vpop.f32.mrf.mxu2 }
  0xed   :  { %646 = vst.msk [vmem:[%s1276_s3 + $0x20] sm:$0xff] %vm641_vm1, %v637_v44  ;;  %v568_v51 = vadd.f32 %v567_v47, %v539_v43 }
  0xee   :  { %v541_v55 = vpop.f32.mrf.mxu1 }
  0xef   :  { %v597_v52 = vadd.f32 %v596_v42, %v568_v51  ;;  %v542_v48 = vadd.f32 %v541_v55, %v513_v53 }
  0xf1   :  { %v626_v54 = vadd.f32 %v625_v45, %v597_v52 }
  0xf3   :  { %v638_v56 = vmax.f32 %v626_v54, 0.0 }
  0xf4   :  { %v570_v58 = vpop.f32.mrf.mxu2 }
  0xf5   :  { %647 = vst.msk [vmem:[%s1276_s3 + $0x28] sm:$0xff] %vm641_vm1, %v638_v56  ;;  %v571_v60 = vadd.f32 %v570_v58, %v542_v48 }
  0xf6   :  { %v543_v1 = vpop.f32.mrf.mxu1 }
  0xf7   :  { %v600_v62 = vadd.f32 %v599_v57, %v571_v60  ;;  %v544_v46 = vadd.f32 %v543_v1, %v515_v63 }
  0xf9   :  { %v629_v0 = vadd.f32 %v628_v61, %v600_v62 }
  0xfb   :  { %v639_v2 = vmax.f32 %v629_v0, 0.0 }
  0xfc   :  { %v572_v3 = vpop.f32.mrf.mxu2 }
  0xfd   :  { %648 = vst.msk [vmem:[%s1276_s3 + $0x30] sm:$0xff] %vm641_vm1, %v639_v2  ;;  %v573_v4 = vadd.f32 %v572_v3, %v544_v46 }
  0xff   :  { %v602_v6 = vadd.f32 %v601_v5, %v573_v4 }
 0x101   :  { %v631_v8 = vadd.f32 %v630_v7, %v602_v6 }
 0x103   :  { %v640_v9 = vmax.f32 %v631_v8, 0.0 }
 0x105   :  { %649 = vst.msk [vmem:[%s1276_s3 + $0x38] sm:$0xff] %vm641_vm1, %v640_v9 }

// kernel: ppo_forward.8
= control target key start
LH: loop header
LB: loop body
LE: loop exit
PB: predicated region body
PF: predicated region fallthrough
CT: control target
= control target key end

     0   :  { %s1216_s1 = inlined_call_operand.vmem [shape: bf16[1024,128], index: 1, kind: input, shape index: {}]   ;;  %s1217_s0 = inlined_call_operand.vmem [shape: bf16[2,1024], index: 0, kind: input, shape index: {}]   ;;  %s1218_s2 = inlined_call_operand.vmem [shape: f32[1,128], index: 2, kind: input, shape index: {}]   ;;  %s1219_s3 = inlined_call_operand.vmem [shape: f32[2,128], index: 3, kind: output, shape index: {}]  }
   0x1   :  { %v935_v0 = vld [vmem:[%s1216_s1 + $0x38] sm:$0xff]  ;;  %v934_v4 = vld [vmem:[%s1216_s1 + $0x30] sm:$0xff]  ;;  %v933_v8 = vld [vmem:[%s1216_s1 + $0x28] sm:$0xff] }
   0x2   :  { %v943_v1 = vld [vmem:[%s1216_s1 + $0x78] sm:$0xff]  ;;  %551 = vmatpush.bf16.msra.mxu0 %v935_v0  ;;  %v942_v5 = vld [vmem:[%s1216_s1 + $0x70] sm:$0xff]  ;;  %v941_v9 = vld [vmem:[%s1216_s1 + $0x68] sm:$0xff] }
   0x3   :  { %v951_v2 = vld [vmem:[%s1216_s1 + $0xb8] sm:$0xff]  ;;  %564 = vmatpush.bf16.msra.mxu1 %v943_v1  ;;  %v950_v6 = vld [vmem:[%s1216_s1 + $0xb0] sm:$0xff]  ;;  %v949_v10 = vld [vmem:[%s1216_s1 + $0xa8] sm:$0xff] }
   0x4   :  { %v959_v3 = vld [vmem:[%s1216_s1 + $0xf8] sm:$0xff]  ;;  %577 = vmatpush.bf16.msra.mxu2 %v951_v2  ;;  %v958_v7 = vld [vmem:[%s1216_s1 + $0xf0] sm:$0xff]  ;;  %v957_v11 = vld [vmem:[%s1216_s1 + $0xe8] sm:$0xff] }
   0x5   :  { %590 = vmatpush.bf16.msra.mxu3 %v959_v3  ;;  %v932_v12 = vld [vmem:[%s1216_s1 + $0x20] sm:$0xff]  ;;  %v931_v17 = vld [vmem:[%s1216_s1 + $0x18] sm:$0xff]  ;;  %v930_v21 = vld [vmem:[%s1216_s1 + $0x10] sm:$0xff] }
   0x6   :  { %552 = vmatpush.bf16.msra.mxu0 %v934_v4  ;;  %v940_v13 = vld [vmem:[%s1216_s1 + $0x60] sm:$0xff]  ;;  %v939_v18 = vld [vmem:[%s1216_s1 + $0x58] sm:$0xff]  ;;  %v938_v22 = vld [vmem:[%s1216_s1 + $0x50] sm:$0xff] }
   0x7   :  { %565 = vmatpush.bf16.msra.mxu1 %v942_v5  ;;  %v948_v14 = vld [vmem:[%s1216_s1 + $0xa0] sm:$0xff]  ;;  %v947_v19 = vld [vmem:[%s1216_s1 + $0x98] sm:$0xff]  ;;  %v946_v23 = vld [vmem:[%s1216_s1 + $0x90] sm:$0xff] }
   0x8   :  { %578 = vmatpush.bf16.msra.mxu2 %v950_v6  ;;  %v956_v15 = vld [vmem:[%s1216_s1 + $0xe0] sm:$0xff]  ;;  %v955_v20 = vld [vmem:[%s1216_s1 + $0xd8] sm:$0xff]  ;;  %v954_v24 = vld [vmem:[%s1216_s1 + $0xd0] sm:$0xff] }
   0x9   :  { %591 = vmatpush.bf16.msra.mxu3 %v958_v7  ;;  %v20_v16 = vld [vmem:[%s1217_s0] sm:$0xff]  ;;  %v929_v25 = vld [vmem:[%s1216_s1 + $0x8] sm:$0xff]  ;;  %v967_v33 = vld [vmem:[%s1216_s1 + $0x138] sm:$0xff] }
   0xa   :  { %553 = vmatpush.bf16.msra.mxu0 %v933_v8  ;;  %150 = vst [vmem:[#allocation1] ss:$9 sm:$0xff] %v20_v16  ;;  %v937_v26 = vld [vmem:[%s1216_s1 + $0x48] sm:$0xff]  ;;  %v928_v29 = vld [vmem:[%s1216_s1] sm:$0xff]  ;;  %v975_v34 = vld [vmem:[%s1216_s1 + $0x178] sm:$0xff] }
   0xb   :  { %566 = vmatpush.bf16.msra.mxu1 %v941_v9  ;;  %v945_v27 = vld [vmem:[%s1216_s1 + $0x88] sm:$0xff]  ;;  %v936_v30 = vld [vmem:[%s1216_s1 + $0x40] sm:$0xff]  ;;  %v983_v35 = vld [vmem:[%s1216_s1 + $0x1b8] sm:$0xff] }
   0xc   :  { %579 = vmatpush.bf16.msra.mxu2 %v949_v10  ;;  %v953_v28 = vld [vmem:[%s1216_s1 + $0xc8] sm:$0xff]  ;;  %v944_v31 = vld [vmem:[%s1216_s1 + $0x80] sm:$0xff]  ;;  %v991_v36 = vld [vmem:[%s1216_s1 + $0x1f8] sm:$0xff] }
   0xd   :  { %592 = vmatpush.bf16.msra.mxu3 %v957_v11  ;;  %v952_v32 = vld [vmem:[%s1216_s1 + $0xc0] sm:$0xff]  ;;  %v966_v37 = vld [vmem:[%s1216_s1 + $0x130] sm:$0xff]  ;;  %v965_v45 = vld [vmem:[%s1216_s1 + $0x128] sm:$0xff]  ;;  %v994_v11 = vmov 0.0  }
   0xe   :  { %554 = vmatpush.bf16.msra.mxu0 %v932_v12  ;;  %v974_v40 = vld [vmem:[%s1216_s1 + $0x170] sm:$0xff]  ;;  %v973_v46 = vld [vmem:[%s1216_s1 + $0x168] sm:$0xff]  ;;  %v964_v49 = vld [vmem:[%s1216_s1 + $0x120] sm:$0xff]  ;;  %18 = vst [vmem:[#allocation2] sm:$0x3] %v994_v11 }
   0xf   :  { %567 = vmatpush.bf16.msra.mxu1 %v940_v13  ;;  %v982_v43 = vld [vmem:[%s1216_s1 + $0x1b0] sm:$0xff]  ;;  %v981_v47 = vld [vmem:[%s1216_s1 + $0x1a8] sm:$0xff]  ;;  %v972_v50 = vld [vmem:[%s1216_s1 + $0x160] sm:$0xff] }
  0x10   :  { %580 = vmatpush.bf16.msra.mxu2 %v948_v14  ;;  %v990_v44 = vld [vmem:[%s1216_s1 + $0x1f0] sm:$0xff]  ;;  %v989_v48 = vld [vmem:[%s1216_s1 + $0x1e8] sm:$0xff]  ;;  %v980_v51 = vld [vmem:[%s1216_s1 + $0x1a0] sm:$0xff] }
  0x11   :  { %593 = vmatpush.bf16.msra.mxu3 %v956_v15  ;;  %v153_v38 = vld [vmem:[#allocation1 + $0x12] sm:$0xff]  ;;  %v151_v39 = vld [vmem:[#allocation1] sm:$0xff]  ;;  %v152_v42 = vld [vmem:[#allocation1 + $0x9] sm:$0xff] }
  0x12   :  { %555 = vmatpush.bf16.msra.mxu0 %v931_v17  ;;  %v154_v41 = vld [vmem:[#allocation1 + $0x1b] sm:$0xff]  ;;  %v962_v57 = vld [vmem:[%s1216_s1 + $0x110] sm:$0xff]  ;;  %v961_v61 = vld [vmem:[%s1216_s1 + $0x108] sm:$0xff] }
  0x13   :  { %568 = vmatpush.bf16.msra.mxu1 %v939_v18  ;;  %v988_v52 = vld [vmem:[%s1216_s1 + $0x1e0] sm:$0xff]  ;;  %v963_v53 = vld [vmem:[%s1216_s1 + $0x118] sm:$0xff]  ;;  %v970_v58 = vld [vmem:[%s1216_s1 + $0x150] sm:$0xff] }
  0x14   :  { %581 = vmatpush.bf16.msra.mxu2 %v947_v19  ;;  %v971_v54 = vld [vmem:[%s1216_s1 + $0x158] sm:$0xff]  ;;  %v978_v59 = vld [vmem:[%s1216_s1 + $0x190] sm:$0xff]  ;;  %v969_v62 = vld [vmem:[%s1216_s1 + $0x148] sm:$0xff] }
  0x15   :  { %594 = vmatpush.bf16.msra.mxu3 %v955_v20  ;;  %v979_v55 = vld [vmem:[%s1216_s1 + $0x198] sm:$0xff]  ;;  %v986_v60 = vld [vmem:[%s1216_s1 + $0x1d0] sm:$0xff]  ;;  %v977_v63 = vld [vmem:[%s1216_s1 + $0x188] sm:$0xff] }
  0x16   :  { %556 = vmatpush.bf16.msra.mxu0 %v930_v21  ;;  %v987_v56 = vld [vmem:[%s1216_s1 + $0x1d8] sm:$0xff]  ;;  %v985_v0 = vld [vmem:[%s1216_s1 + $0x1c8] sm:$0xff]  ;;  %v960_v1 = vld [vmem:[%s1216_s1 + $0x100] sm:$0xff] }
  0x17   :  { %569 = vmatpush.bf16.msra.mxu1 %v938_v22  ;;  %v968_v2 = vld [vmem:[%s1216_s1 + $0x140] sm:$0xff]  ;;  %v156_v6 = vld [vmem:[#allocation1 + $0x2d] sm:$0xff]  ;;  %v157_v7 = vld [vmem:[#allocation1 + $0x36] sm:$0xff] }
  0x18   :  { %582 = vmatpush.bf16.msra.mxu2 %v946_v23  ;;  %v976_v3 = vld [vmem:[%s1216_s1 + $0x180] sm:$0xff] }
  0x19   :  { %595 = vmatpush.bf16.msra.mxu3 %v954_v24  ;;  %v984_v4 = vld [vmem:[%s1216_s1 + $0x1c0] sm:$0xff] }
  0x1a   :  { %557 = vmatpush.bf16.msra.mxu0 %v929_v25  ;;  %v155_v5 = vld [vmem:[#allocation1 + $0x24] sm:$0xff] }
  0x1b   :  { %570 = vmatpush.bf16.msra.mxu1 %v937_v26  ;;  %v158_v8 = vld [vmem:[#allocation1 + $0x3f] sm:$0xff] }
  0x1c   :  { %583 = vmatpush.bf16.msra.mxu2 %v945_v27 }
  0x1d   :  { %596 = vmatpush.bf16.msra.mxu3 %v953_v28 }
  0x1e   :  { %558 = vmatpush.bf16.msra.mxu0 %v928_v29 }
  0x1f   :  { %571 = vmatpush.bf16.msra.mxu1 %v936_v30  ;;  %v19_v30 = vld [vmem:[#allocation2] sm:$0x3] }
  0x20   :  { %584 = vmatpush.bf16.msra.mxu2 %v944_v31 }
  0x21   :  { %597 = vmatpush.bf16.msra.mxu3 %v952_v32  ;;  %559 = vmatmul.bf16.vlgmr.msra.gmra.mxu0 %v151_v39 }
  0x22   :  { %603 = vmatpush.bf16.msrb.mxu0 %v967_v33  ;;  %572 = vmatmul.bf16.vlgmr.msra.gmra.mxu1 %v152_v42 }
  0x23   :  { %616 = vmatpush.bf16.msrb.mxu1 %v975_v34  ;;  %585 = vmatmul.bf16.vlgmr.msra.gmra.mxu2 %v153_v38 }
  0x24   :  { %629 = vmatpush.bf16.msrb.mxu2 %v983_v35  ;;  %598 = vmatmul.bf16.vlgmr.msra.gmra.mxu3 %v154_v41  ;;  %v993_v35 = vld [vmem:[%s1218_s2] ss:$0 sm:$0xff] }
  0x25   :  { %642 = vmatpush.bf16.msrb.mxu3 %v991_v36 }
  0x26   :  { %604 = vmatpush.bf16.msrb.mxu0 %v966_v37 }
  0x27   :  { %617 = vmatpush.bf16.msrb.mxu1 %v974_v40 }
  0x28   :  { %630 = vmatpush.bf16.msrb.mxu2 %v982_v43 }
  0x29   :  { %643 = vmatpush.bf16.msrb.mxu3 %v990_v44 }
  0x2a   :  { %605 = vmatpush.bf16.msrb.mxu0 %v965_v45 }
  0x2b   :  { %618 = vmatpush.bf16.msrb.mxu1 %v973_v46 }
  0x2c   :  { %631 = vmatpush.bf16.msrb.mxu2 %v981_v47 }
  0x2d   :  { %644 = vmatpush.bf16.msrb.mxu3 %v989_v48 }
  0x2e   :  { %606 = vmatpush.bf16.msrb.mxu0 %v964_v49 }
  0x2f   :  { %619 = vmatpush.bf16.msrb.mxu1 %v972_v50 }
  0x30   :  { %632 = vmatpush.bf16.msrb.mxu2 %v980_v51 }
  0x31   :  { %645 = vmatpush.bf16.msrb.mxu3 %v988_v52 }
  0x32   :  { %607 = vmatpush.bf16.msrb.mxu0 %v963_v53 }
  0x33   :  { %620 = vmatpush.bf16.msrb.mxu1 %v971_v54 }
  0x34   :  { %633 = vmatpush.bf16.msrb.mxu2 %v979_v55 }
  0x35   :  { %646 = vmatpush.bf16.msrb.mxu3 %v987_v56 }
  0x36   :  { %608 = vmatpush.bf16.msrb.mxu0 %v962_v57 }
  0x37   :  { %621 = vmatpush.bf16.msrb.mxu1 %v970_v58 }
  0x38   :  { %634 = vmatpush.bf16.msrb.mxu2 %v978_v59 }
  0x39   :  { %647 = vmatpush.bf16.msrb.mxu3 %v986_v60 }
  0x3a   :  { %609 = vmatpush.bf16.msrb.mxu0 %v961_v61 }
  0x3b   :  { %622 = vmatpush.bf16.msrb.mxu1 %v969_v62 }
  0x3c   :  { %635 = vmatpush.bf16.msrb.mxu2 %v977_v63 }
  0x3d   :  { %648 = vmatpush.bf16.msrb.mxu3 %v985_v0 }
  0x3e   :  { %610 = vmatpush.bf16.msrb.mxu0 %v960_v1 }
  0x3f   :  { %623 = vmatpush.bf16.msrb.mxu1 %v968_v2 }
  0x40   :  { %636 = vmatpush.bf16.msrb.mxu2 %v976_v3 }
  0x41   :  { %649 = vmatpush.bf16.msrb.mxu3 %v984_v4  ;;  %611 = vmatmul.bf16.vlgmr.msrb.gmra.mxu0 %v155_v5 }
  0x42   :  { %624 = vmatmul.bf16.vlgmr.msrb.gmra.mxu1 %v156_v6 }
  0x43   :  { %637 = vmatmul.bf16.vlgmr.msrb.gmra.mxu2 %v157_v7 }
  0x44   :  { %650 = vmatmul.bf16.vlgmr.msrb.gmra.mxu3 %v158_v8 }
  0x9e   :  { %v560_v9 = vpop.f32.mrf.mxu0 }
  0x9f   :  { %v573_v10 = vpop.f32.mrf.mxu1 }
  0xa0   :  { %v574_v18 = vadd.f32 %v573_v10, %v560_v9 }
  0xa6   :  { %v586_v12 = vpop.f32.mrf.mxu2  ;;  %v562_v14 = vpop.f32.mrf.mxu0 }
  0xa7   :  { %v599_v13 = vpop.f32.mrf.mxu3  ;;  %v575_v15 = vpop.f32.mrf.mxu1  ;;  %v587_v19 = vadd.f32 %v586_v12, %v574_v18 }
  0xa9   :  { %v600_v20 = vadd.f32 %v599_v13, %v587_v19 }
  0xae   :  { %v588_v16 = vpop.f32.mrf.mxu2 }
  0xaf   :  { %v601_v17 = vpop.f32.mrf.mxu3 }
  0xbe   :  { %v612_v21 = vpop.f32.mrf.mxu0 }
  0xbf   :  { %v625_v22 = vpop.f32.mrf.mxu1  ;;  %v613_v23 = vadd.f32 %v612_v21, %v600_v20 }
  0xc1   :  { %v626_v24 = vadd.f32 %v625_v22, %v613_v23 }
  0xc6   :  { %v638_v25 = vpop.f32.mrf.mxu2  ;;  %v614_v28 = vpop.f32.mrf.mxu0 }
  0xc7   :  { %v651_v26 = vpop.f32.mrf.mxu3  ;;  %v639_v27 = vadd.f32 %v638_v25, %v626_v24  ;;  %v627_v29 = vpop.f32.mrf.mxu1 }
  0xc9   :  { %v652_v31 = vadd.f32 %v651_v26, %v639_v27 }
  0xcb   :  { %v655_v32 = vadd.f32 %v652_v31, %v19_v30 }
  0xcd   :  { %656 = vst [vmem:[#allocation2] sm:$0x3] %v655_v32 }
  0xce   :  { %v640_v33 = vpop.f32.mrf.mxu2 }
  0xcf   :  { %v653_v34 = vpop.f32.mrf.mxu3 }
  0xd4   :  { %v660_v36 = vld [vmem:[#allocation2] sm:$0x3] }
  0xd5   :  { %v665_v37 = vadd.f32 %v993_v35, %v660_v36 }
  0xd7   :  { %v666_v38 = vmax.f32 %v665_v37, 0.0 }
  0xd9   :  { %667 = vst [vmem:[%s1219_s3] sm:$0x3] %v666_v38 }

// kernel: ppo_forward.9
= control target key start
LH: loop header
LB: loop body
LE: loop exit
PB: predicated region body
PF: predicated region fallthrough
CT: control target
= control target key end

     0   :  { %vm639_vm3 = vcmask 25600   ;;  %s1401_s2 = inlined_call_operand.vmem [shape: f32[128,512], index: 2, kind: input, shape index: {}]   ;;  %s1402_s0 = inlined_call_operand.vmem [shape: f32[2,128], index: 0, kind: input, shape index: {}]   ;;  %s1403_s5 = inlined_call_operand.vmem [shape: f32[512,256], index: 5, kind: input, shape index: {}]   ;;  %s1404_s1 = inlined_call_operand.vmem [shape: f32[2,2], index: 1, kind: input, shape index: {}]   ;;  %s1405_s3 = inlined_call_operand.vmem [shape: f32[2,512], index: 3, kind: input, shape index: {}]   ;;  %s1406_s4 = inlined_call_operand.vmem [shape: f32[1,512], index: 4, kind: input, shape index: {}]   ;;  %s1407_s7 = inlined_call_operand.vmem [shape: f32[256,4], index: 7, kind: input, shape index: {}]   ;;  %s1408_s8 = inlined_call_operand.vmem [shape: f32[1,4], index: 8, kind: input, shape index: {}]   ;;  %s1409_s6 = inlined_call_operand.vmem [shape: f32[1,256], index: 6, kind: input, shape index: {}]   ;;  %s1410_s9 = inlined_call_operand.vmem [shape: f32[2,4], index: 9, kind: output, shape index: {}]  }
   0x1   :  { %v93_v0 = vld [vmem:[%s1401_s2 + $0x1e0] sm:$0xff]  ;;  %v94_v1 = vld [vmem:[%s1401_s2 + $0x1e8] sm:$0xff]  ;;  %v95_v2 = vld [vmem:[%s1401_s2 + $0x1f0] sm:$0xff] }
   0x2   :  { %121 = vmatpush.msra.mxu0 %v93_v0  ;;  %141 = vmatpush.msra.mxu1 %v94_v1  ;;  %v96_v3 = vld [vmem:[%s1401_s2 + $0x1f8] sm:$0xff]  ;;  %v89_v4 = vld [vmem:[%s1401_s2 + $0x1c0] sm:$0xff]  ;;  %v90_v5 = vld [vmem:[%s1401_s2 + $0x1c8] sm:$0xff] }
   0x3   :  { %161 = vmatpush.msra.mxu2 %v95_v2  ;;  %181 = vmatpush.msra.mxu3 %v96_v3  ;;  %v91_v6 = vld [vmem:[%s1401_s2 + $0x1d0] sm:$0xff]  ;;  %v92_v7 = vld [vmem:[%s1401_s2 + $0x1d8] sm:$0xff]  ;;  %v85_v8 = vld [vmem:[%s1401_s2 + $0x1a0] sm:$0xff] }
   0x4   :  { %122 = vmatpush.msra.mxu0 %v89_v4  ;;  %142 = vmatpush.msra.mxu1 %v90_v5  ;;  %v86_v9 = vld [vmem:[%s1401_s2 + $0x1a8] sm:$0xff]  ;;  %v87_v10 = vld [vmem:[%s1401_s2 + $0x1b0] sm:$0xff]  ;;  %v88_v11 = vld [vmem:[%s1401_s2 + $0x1b8] sm:$0xff] }
   0x5   :  { %162 = vmatpush.msra.mxu2 %v91_v6  ;;  %182 = vmatpush.msra.mxu3 %v92_v7  ;;  %v81_v12 = vld [vmem:[%s1401_s2 + $0x180] sm:$0xff]  ;;  %v82_v13 = vld [vmem:[%s1401_s2 + $0x188] sm:$0xff]  ;;  %v83_v14 = vld [vmem:[%s1401_s2 + $0x190] sm:$0xff]  ;;  %v656_v6 = vmov 0  }
   0x6   :  { %123 = vmatpush.msra.mxu0 %v85_v8  ;;  %143 = vmatpush.msra.mxu1 %v86_v9  ;;  %v84_v15 = vld [vmem:[%s1401_s2 + $0x198] sm:$0xff]  ;;  %v77_v16 = vld [vmem:[%s1401_s2 + $0x160] sm:$0xff]  ;;  %v78_v17 = vld [vmem:[%s1401_s2 + $0x168] sm:$0xff] }
   0x7   :  { %163 = vmatpush.msra.mxu2 %v87_v10  ;;  %183 = vmatpush.msra.mxu3 %v88_v11  ;;  %v79_v18 = vld [vmem:[%s1401_s2 + $0x170] sm:$0xff]  ;;  %v80_v19 = vld [vmem:[%s1401_s2 + $0x178] sm:$0xff]  ;;  %v73_v20 = vld [vmem:[%s1401_s2 + $0x140] sm:$0xff] }
   0x8   :  { %124 = vmatpush.msra.mxu0 %v81_v12  ;;  %144 = vmatpush.msra.mxu1 %v82_v13  ;;  %v74_v21 = vld [vmem:[%s1401_s2 + $0x148] sm:$0xff]  ;;  %v75_v22 = vld [vmem:[%s1401_s2 + $0x150] sm:$0xff]  ;;  %v76_v23 = vld [vmem:[%s1401_s2 + $0x158] sm:$0xff] }
   0x9   :  { %164 = vmatpush.msra.mxu2 %v83_v14  ;;  %184 = vmatpush.msra.mxu3 %v84_v15  ;;  %v69_v24 = vld [vmem:[%s1401_s2 + $0x120] sm:$0xff]  ;;  %v70_v25 = vld [vmem:[%s1401_s2 + $0x128] sm:$0xff]  ;;  %v71_v26 = vld [vmem:[%s1401_s2 + $0x130] sm:$0xff] }
   0xa   :  { %125 = vmatpush.msra.mxu0 %v77_v16  ;;  %145 = vmatpush.msra.mxu1 %v78_v17  ;;  %v72_v27 = vld [vmem:[%s1401_s2 + $0x138] sm:$0xff]  ;;  %v65_v28 = vld [vmem:[%s1401_s2 + $0x100] sm:$0xff]  ;;  %v66_v29 = vld [vmem:[%s1401_s2 + $0x108] sm:$0xff] }
   0xb   :  { %165 = vmatpush.msra.mxu2 %v79_v18  ;;  %185 = vmatpush.msra.mxu3 %v80_v19  ;;  %v67_v30 = vld [vmem:[%s1401_s2 + $0x110] sm:$0xff]  ;;  %v68_v31 = vld [vmem:[%s1401_s2 + $0x118] sm:$0xff]  ;;  %v61_v32 = vld [vmem:[%s1401_s2 + $0xe0] sm:$0xff] }
   0xc   :  { %126 = vmatpush.msra.mxu0 %v73_v20  ;;  %146 = vmatpush.msra.mxu1 %v74_v21  ;;  %v62_v33 = vld [vmem:[%s1401_s2 + $0xe8] sm:$0xff]  ;;  %v63_v34 = vld [vmem:[%s1401_s2 + $0xf0] sm:$0xff]  ;;  %v64_v35 = vld [vmem:[%s1401_s2 + $0xf8] sm:$0xff] }
   0xd   :  { %166 = vmatpush.msra.mxu2 %v75_v22  ;;  %186 = vmatpush.msra.mxu3 %v76_v23  ;;  %v57_v36 = vld [vmem:[%s1401_s2 + $0xc0] sm:$0xff]  ;;  %v58_v37 = vld [vmem:[%s1401_s2 + $0xc8] sm:$0xff]  ;;  %v59_v38 = vld [vmem:[%s1401_s2 + $0xd0] sm:$0xff]  ;;  %v657_v23 = vmov 1  }
   0xe   :  { %127 = vmatpush.msra.mxu0 %v69_v24  ;;  %147 = vmatpush.msra.mxu1 %v70_v25  ;;  %v60_v39 = vld [vmem:[%s1401_s2 + $0xd8] sm:$0xff]  ;;  %v53_v40 = vld [vmem:[%s1401_s2 + $0xa0] sm:$0xff]  ;;  %v54_v41 = vld [vmem:[%s1401_s2 + $0xa8] sm:$0xff] }
   0xf   :  { %167 = vmatpush.msra.mxu2 %v71_v26  ;;  %187 = vmatpush.msra.mxu3 %v72_v27  ;;  %v55_v42 = vld [vmem:[%s1401_s2 + $0xb0] sm:$0xff]  ;;  %v56_v43 = vld [vmem:[%s1401_s2 + $0xb8] sm:$0xff]  ;;  %v49_v44 = vld [vmem:[%s1401_s2 + $0x80] sm:$0xff] }
  0x10   :  { %128 = vmatpush.msra.mxu0 %v65_v28  ;;  %148 = vmatpush.msra.mxu1 %v66_v29  ;;  %v50_v45 = vld [vmem:[%s1401_s2 + $0x88] sm:$0xff]  ;;  %v51_v46 = vld [vmem:[%s1401_s2 + $0x90] sm:$0xff]  ;;  %v52_v47 = vld [vmem:[%s1401_s2 + $0x98] sm:$0xff] }
  0x11   :  { %168 = vmatpush.msra.mxu2 %v67_v30  ;;  %188 = vmatpush.msra.mxu3 %v68_v31  ;;  %v45_v48 = vld [vmem:[%s1401_s2 + $0x60] sm:$0xff]  ;;  %v46_v49 = vld [vmem:[%s1401_s2 + $0x68] sm:$0xff]  ;;  %v47_v50 = vld [vmem:[%s1401_s2 + $0x70] sm:$0xff] }
  0x12   :  { %129 = vmatpush.msra.mxu0 %v61_v32  ;;  %149 = vmatpush.msra.mxu1 %v62_v33  ;;  %v48_v51 = vld [vmem:[%s1401_s2 + $0x78] sm:$0xff]  ;;  %v41_v52 = vld [vmem:[%s1401_s2 + $0x40] sm:$0xff]  ;;  %v42_v53 = vld [vmem:[%s1401_s2 + $0x48] sm:$0xff] }
  0x13   :  { %169 = vmatpush.msra.mxu2 %v63_v34  ;;  %189 = vmatpush.msra.mxu3 %v64_v35  ;;  %v43_v54 = vld [vmem:[%s1401_s2 + $0x50] sm:$0xff]  ;;  %v44_v55 = vld [vmem:[%s1401_s2 + $0x58] sm:$0xff]  ;;  %v37_v56 = vld [vmem:[%s1401_s2 + $0x20] sm:$0xff] }
  0x14   :  { %130 = vmatpush.msra.mxu0 %v57_v36  ;;  %150 = vmatpush.msra.mxu1 %v58_v37  ;;  %v38_v57 = vld [vmem:[%s1401_s2 + $0x28] sm:$0xff]  ;;  %v39_v58 = vld [vmem:[%s1401_s2 + $0x30] sm:$0xff]  ;;  %v40_v59 = vld [vmem:[%s1401_s2 + $0x38] sm:$0xff] }
  0x15   :  { %170 = vmatpush.msra.mxu2 %v59_v38  ;;  %190 = vmatpush.msra.mxu3 %v60_v39  ;;  %v33_v60 = vld [vmem:[%s1401_s2] sm:$0xff]  ;;  %v34_v61 = vld [vmem:[%s1401_s2 + $0x8] sm:$0xff]  ;;  %v35_v62 = vld [vmem:[%s1401_s2 + $0x10] sm:$0xff] }
  0x16   :  { %131 = vmatpush.msra.mxu0 %v53_v40  ;;  %151 = vmatpush.msra.mxu1 %v54_v41  ;;  %v36_v63 = vld [vmem:[%s1401_s2 + $0x18] sm:$0xff]  ;;  %v32_v0 = vld [vmem:[%s1402_s0] sm:$0x3]  ;;  %v273_v1 = vld [vmem:[%s1403_s5 + $0xf0] sm:$0xff] }
  0x17   :  { %171 = vmatpush.msra.mxu2 %v55_v42  ;;  %191 = vmatpush.msra.mxu3 %v56_v43  ;;  %v97_v2 = vld [vmem:[%s1404_s1] sm:$0x3]  ;;  %v305_v3 = vld [vmem:[%s1403_s5 + $0x1f0] sm:$0xff] }
  0x18   :  { %132 = vmatpush.msra.mxu0 %v49_v44  ;;  %152 = vmatpush.msra.mxu1 %v50_v45  ;;  %v271_v4 = vld [vmem:[%s1403_s5 + $0xe0] sm:$0xff]  ;;  %v337_v5 = vld [vmem:[%s1403_s5 + $0x2f0] sm:$0xff] }
  0x19   :  { %172 = vmatpush.msra.mxu2 %v51_v46  ;;  %192 = vmatpush.msra.mxu3 %v52_v47  ;;  %v303_v7 = vld [vmem:[%s1403_s5 + $0x1e0] sm:$0xff]  ;;  %v369_v8 = vld [vmem:[%s1403_s5 + $0x3f0] sm:$0xff] }
  0x1a   :  { %133 = vmatpush.msra.mxu0 %v45_v48  ;;  %153 = vmatpush.msra.mxu1 %v46_v49  ;;  %v269_v9 = vld [vmem:[%s1403_s5 + $0xd0] sm:$0xff]  ;;  %v335_v10 = vld [vmem:[%s1403_s5 + $0x2e0] sm:$0xff] }
  0x1b   :  { %173 = vmatpush.msra.mxu2 %v47_v50  ;;  %193 = vmatpush.msra.mxu3 %v48_v51  ;;  %v301_v11 = vld [vmem:[%s1403_s5 + $0x1d0] sm:$0xff]  ;;  %v367_v12 = vld [vmem:[%s1403_s5 + $0x3e0] sm:$0xff] }
  0x1c   :  { %134 = vmatpush.msra.mxu0 %v41_v52  ;;  %154 = vmatpush.msra.mxu1 %v42_v53  ;;  %v267_v13 = vld [vmem:[%s1403_s5 + $0xc0] sm:$0xff]  ;;  %v333_v14 = vld [vmem:[%s1403_s5 + $0x2d0] sm:$0xff] }
  0x1d   :  { %174 = vmatpush.msra.mxu2 %v43_v54  ;;  %194 = vmatpush.msra.mxu3 %v44_v55  ;;  %v299_v15 = vld [vmem:[%s1403_s5 + $0x1c0] sm:$0xff]  ;;  %v365_v16 = vld [vmem:[%s1403_s5 + $0x3d0] sm:$0xff] }
  0x1e   :  { %135 = vmatpush.msra.mxu0 %v37_v56  ;;  %155 = vmatpush.msra.mxu1 %v38_v57  ;;  %v265_v17 = vld [vmem:[%s1403_s5 + $0xb0] sm:$0xff]  ;;  %v331_v18 = vld [vmem:[%s1403_s5 + $0x2c0] sm:$0xff] }
  0x1f   :  { %175 = vmatpush.msra.mxu2 %v39_v58  ;;  %195 = vmatpush.msra.mxu3 %v40_v59  ;;  %v297_v19 = vld [vmem:[%s1403_s5 + $0x1b0] sm:$0xff]  ;;  %v263_v20 = vld [vmem:[%s1403_s5 + $0xa0] sm:$0xff] }
  0x20   :  { %136 = vmatpush.msra.mxu0 %v33_v60  ;;  %156 = vmatpush.msra.mxu1 %v34_v61  ;;  %v295_v21 = vld [vmem:[%s1403_s5 + $0x1a0] sm:$0xff]  ;;  %v261_v24 = vld [vmem:[%s1403_s5 + $0x90] sm:$0xff] }
  0x21   :  { %176 = vmatpush.msra.mxu2 %v35_v62  ;;  %196 = vmatpush.msra.mxu3 %v36_v63  ;;  %v363_v22 = vld [vmem:[%s1403_s5 + $0x3c0] sm:$0xff]  ;;  %v329_v25 = vld [vmem:[%s1403_s5 + $0x2b0] sm:$0xff]  ;;  %v274_v63 = vld [vmem:[%s1403_s5 + $0xf8] sm:$0xff] }
  0x22   :  { %137 = vmatmul.f32.vlgmr.msra.gmra.mxu0 %v32_v0  ;;  %157 = vmatmul.f32.vlgmr.msra.gmra.mxu1 %v32_v0  ;;  %v293_v26 = vld [vmem:[%s1403_s5 + $0x190] sm:$0xff]  ;;  %v259_v28 = vld [vmem:[%s1403_s5 + $0x80] sm:$0xff] }
  0x23   :  { %177 = vmatmul.f32.vlgmr.msra.gmra.mxu2 %v32_v0  ;;  %197 = vmatmul.f32.vlgmr.msra.gmra.mxu3 %v32_v0  ;;  %v361_v27 = vld [vmem:[%s1403_s5 + $0x3b0] sm:$0xff]  ;;  %v327_v29 = vld [vmem:[%s1403_s5 + $0x2a0] sm:$0xff]  ;;  %v306_v0 = vld [vmem:[%s1403_s5 + $0x1f8] sm:$0xff] }
  0x24   :  { %647 = vset.pattern.permute.xlu0 %v656_v6  ;;  %377 = vmatpush.msrb.mxu0 %v273_v1  ;;  %v291_v30 = vld [vmem:[%s1403_s5 + $0x180] sm:$0xff]  ;;  %v257_v32 = vld [vmem:[%s1403_s5 + $0x70] sm:$0xff]  ;;  %v270_v6 = vld [vmem:[%s1403_s5 + $0xd8] sm:$0xff] }
  0x25   :  { %101 = vperm.xlu0 %647, %v97_v2   ;;  %397 = vmatpush.msrb.mxu1 %v305_v3  ;;  %v359_v31 = vld [vmem:[%s1403_s5 + $0x3a0] sm:$0xff]  ;;  %v325_v33 = vld [vmem:[%s1403_s5 + $0x290] sm:$0xff] }
  0x26   :  { %378 = vmatpush.msrb.mxu0 %v271_v4  ;;  %417 = vmatpush.msrb.mxu2 %v337_v5  ;;  %v289_v34 = vld [vmem:[%s1403_s5 + $0x170] sm:$0xff]  ;;  %v255_v36 = vld [vmem:[%s1403_s5 + $0x60] sm:$0xff]  ;;  %v304_v4 = vld [vmem:[%s1403_s5 + $0x1e8] sm:$0xff] }
  0x27   :  { %398 = vmatpush.msrb.mxu1 %v303_v7  ;;  %437 = vmatpush.msrb.mxu3 %v369_v8  ;;  %v357_v35 = vld [vmem:[%s1403_s5 + $0x390] sm:$0xff]  ;;  %v323_v37 = vld [vmem:[%s1403_s5 + $0x280] sm:$0xff]  ;;  %v302_v8 = vld [vmem:[%s1403_s5 + $0x1d8] sm:$0xff] }
  0x28   :  { %379 = vmatpush.msrb.mxu0 %v269_v9  ;;  %418 = vmatpush.msrb.mxu2 %v335_v10  ;;  %v287_v38 = vld [vmem:[%s1403_s5 + $0x160] sm:$0xff]  ;;  %v253_v40 = vld [vmem:[%s1403_s5 + $0x50] sm:$0xff]  ;;  %v268_v10 = vld [vmem:[%s1403_s5 + $0xc8] sm:$0xff] }
  0x29   :  { %399 = vmatpush.msrb.mxu1 %v301_v11  ;;  %438 = vmatpush.msrb.mxu3 %v367_v12  ;;  %v355_v39 = vld [vmem:[%s1403_s5 + $0x380] sm:$0xff]  ;;  %v321_v41 = vld [vmem:[%s1403_s5 + $0x270] sm:$0xff]  ;;  %v300_v11 = vld [vmem:[%s1403_s5 + $0x1c8] sm:$0xff] }
  0x2a   :  { %380 = vmatpush.msrb.mxu0 %v267_v13  ;;  %419 = vmatpush.msrb.mxu2 %v333_v14  ;;  %v285_v42 = vld [vmem:[%s1403_s5 + $0x150] sm:$0xff]  ;;  %v251_v44 = vld [vmem:[%s1403_s5 + $0x40] sm:$0xff]  ;;  %v338_v12 = vld [vmem:[%s1403_s5 + $0x2f8] sm:$0xff] }
  0x2b   :  { %400 = vmatpush.msrb.mxu1 %v299_v15  ;;  %439 = vmatpush.msrb.mxu3 %v365_v16  ;;  %v353_v43 = vld [vmem:[%s1403_s5 + $0x370] sm:$0xff]  ;;  %v319_v45 = vld [vmem:[%s1403_s5 + $0x260] sm:$0xff]  ;;  %v370_v13 = vld [vmem:[%s1403_s5 + $0x3f8] sm:$0xff] }
  0x2c   :  { %381 = vmatpush.msrb.mxu0 %v265_v17  ;;  %420 = vmatpush.msrb.mxu2 %v331_v18  ;;  %v283_v46 = vld [vmem:[%s1403_s5 + $0x140] sm:$0xff]  ;;  %v249_v48 = vld [vmem:[%s1403_s5 + $0x30] sm:$0xff]  ;;  %v266_v14 = vld [vmem:[%s1403_s5 + $0xb8] sm:$0xff] }
  0x2d   :  { %648 = vset.pattern.permute.xlu0 %v657_v23  ;;  %401 = vmatpush.msrb.mxu1 %v297_v19  ;;  %v351_v47 = vld [vmem:[%s1403_s5 + $0x360] sm:$0xff]  ;;  %v317_v49 = vld [vmem:[%s1403_s5 + $0x250] sm:$0xff]  ;;  %v298_v15 = vld [vmem:[%s1403_s5 + $0x1b8] sm:$0xff] }
  0x2e   :  { %202 = vperm.xlu0 %648, %v97_v2   ;;  %382 = vmatpush.msrb.mxu0 %v263_v20  ;;  %v281_v50 = vld [vmem:[%s1403_s5 + $0x130] sm:$0xff]  ;;  %v247_v52 = vld [vmem:[%s1403_s5 + $0x20] sm:$0xff]  ;;  %v272_v2 = vld [vmem:[%s1403_s5 + $0xe8] sm:$0xff] }
  0x2f   :  { %402 = vmatpush.msrb.mxu1 %v295_v21  ;;  %440 = vmatpush.msrb.mxu3 %v363_v22  ;;  %v349_v51 = vld [vmem:[%s1403_s5 + $0x350] sm:$0xff]  ;;  %v315_v53 = vld [vmem:[%s1403_s5 + $0x240] sm:$0xff]  ;;  %v336_v16 = vld [vmem:[%s1403_s5 + $0x2e8] sm:$0xff] }
  0x30   :  { %383 = vmatpush.msrb.mxu0 %v261_v24  ;;  %421 = vmatpush.msrb.mxu2 %v329_v25  ;;  %v279_v54 = vld [vmem:[%s1403_s5 + $0x120] sm:$0xff]  ;;  %v245_v56 = vld [vmem:[%s1403_s5 + $0x10] sm:$0xff]  ;;  %v368_v17 = vld [vmem:[%s1403_s5 + $0x3e8] sm:$0xff] }
  0x31   :  { %403 = vmatpush.msrb.mxu1 %v293_v26  ;;  %441 = vmatpush.msrb.mxu3 %v361_v27  ;;  %v347_v55 = vld [vmem:[%s1403_s5 + $0x340] sm:$0xff]  ;;  %v313_v57 = vld [vmem:[%s1403_s5 + $0x230] sm:$0xff]  ;;  %v264_v18 = vld [vmem:[%s1403_s5 + $0xa8] sm:$0xff] }
  0x32   :  { %384 = vmatpush.msrb.mxu0 %v259_v28  ;;  %422 = vmatpush.msrb.mxu2 %v327_v29  ;;  %v277_v58 = vld [vmem:[%s1403_s5 + $0x110] sm:$0xff]  ;;  %v243_v60 = vld [vmem:[%s1403_s5] sm:$0xff]  ;;  %v296_v19 = vld [vmem:[%s1403_s5 + $0x1a8] sm:$0xff] }
  0x33   :  { %404 = vmatpush.msrb.mxu1 %v291_v30  ;;  %442 = vmatpush.msrb.mxu3 %v359_v31  ;;  %v345_v59 = vld [vmem:[%s1403_s5 + $0x330] sm:$0xff]  ;;  %v311_v61 = vld [vmem:[%s1403_s5 + $0x220] sm:$0xff]  ;;  %v334_v20 = vld [vmem:[%s1403_s5 + $0x2d8] sm:$0xff] }
  0x34   :  { %385 = vmatpush.msrb.mxu0 %v257_v32  ;;  %423 = vmatpush.msrb.mxu2 %v325_v33  ;;  %v275_v62 = vld [vmem:[%s1403_s5 + $0x100] sm:$0xff]  ;;  %v309_v3 = vld [vmem:[%s1403_s5 + $0x210] sm:$0xff]  ;;  %v366_v21 = vld [vmem:[%s1403_s5 + $0x3d8] sm:$0xff] }
  0x35   :  { %405 = vmatpush.msrb.mxu1 %v289_v34  ;;  %443 = vmatpush.msrb.mxu3 %v357_v35  ;;  %v343_v1 = vld [vmem:[%s1403_s5 + $0x320] sm:$0xff]  ;;  %v341_v5 = vld [vmem:[%s1403_s5 + $0x310] sm:$0xff]  ;;  %v262_v22 = vld [vmem:[%s1403_s5 + $0x98] sm:$0xff] }
  0x36   :  { %386 = vmatpush.msrb.mxu0 %v255_v36  ;;  %424 = vmatpush.msrb.mxu2 %v323_v37  ;;  %v307_v7 = vld [vmem:[%s1403_s5 + $0x200] sm:$0xff]  ;;  %v294_v23 = vld [vmem:[%s1403_s5 + $0x198] sm:$0xff]  ;;  %v332_v24 = vld [vmem:[%s1403_s5 + $0x2c8] sm:$0xff] }
  0x37   :  { %406 = vmatpush.msrb.mxu1 %v287_v38  ;;  %444 = vmatpush.msrb.mxu3 %v355_v39  ;;  %v339_v9 = vld [vmem:[%s1403_s5 + $0x300] sm:$0xff]  ;;  %v364_v25 = vld [vmem:[%s1403_s5 + $0x3c8] sm:$0xff]  ;;  %v330_v28 = vld [vmem:[%s1403_s5 + $0x2b8] sm:$0xff] }
  0x38   :  { %387 = vmatpush.msrb.mxu0 %v253_v40  ;;  %425 = vmatpush.msrb.mxu2 %v321_v41  ;;  %v260_v26 = vld [vmem:[%s1403_s5 + $0x88] sm:$0xff]  ;;  %v362_v29 = vld [vmem:[%s1403_s5 + $0x3b8] sm:$0xff] }
  0x39   :  { %407 = vmatpush.msrb.mxu1 %v285_v42  ;;  %445 = vmatpush.msrb.mxu3 %v353_v43  ;;  %v292_v27 = vld [vmem:[%s1403_s5 + $0x188] sm:$0xff]  ;;  %v258_v30 = vld [vmem:[%s1403_s5 + $0x78] sm:$0xff] }
  0x3a   :  { %388 = vmatpush.msrb.mxu0 %v251_v44  ;;  %426 = vmatpush.msrb.mxu2 %v319_v45  ;;  %v290_v31 = vld [vmem:[%s1403_s5 + $0x178] sm:$0xff]  ;;  %v328_v32 = vld [vmem:[%s1403_s5 + $0x2a8] sm:$0xff] }
  0x3b   :  { %408 = vmatpush.msrb.mxu1 %v283_v46  ;;  %446 = vmatpush.msrb.mxu3 %v351_v47  ;;  %v360_v33 = vld [vmem:[%s1403_s5 + $0x3a8] sm:$0xff]  ;;  %v326_v36 = vld [vmem:[%s1403_s5 + $0x298] sm:$0xff] }
  0x3c   :  { %389 = vmatpush.msrb.mxu0 %v249_v48  ;;  %427 = vmatpush.msrb.mxu2 %v317_v49  ;;  %v256_v34 = vld [vmem:[%s1403_s5 + $0x68] sm:$0xff]  ;;  %v358_v37 = vld [vmem:[%s1403_s5 + $0x398] sm:$0xff] }
  0x3d   :  { %409 = vmatpush.msrb.mxu1 %v281_v50  ;;  %447 = vmatpush.msrb.mxu3 %v349_v51  ;;  %v288_v35 = vld [vmem:[%s1403_s5 + $0x168] sm:$0xff]  ;;  %v254_v38 = vld [vmem:[%s1403_s5 + $0x58] sm:$0xff] }
  0x3e   :  { %390 = vmatpush.msrb.mxu0 %v247_v52  ;;  %428 = vmatpush.msrb.mxu2 %v315_v53  ;;  %v286_v39 = vld [vmem:[%s1403_s5 + $0x158] sm:$0xff]  ;;  %v324_v40 = vld [vmem:[%s1403_s5 + $0x288] sm:$0xff] }
  0x3f   :  { %410 = vmatpush.msrb.mxu1 %v279_v54  ;;  %448 = vmatpush.msrb.mxu3 %v347_v55  ;;  %v356_v41 = vld [vmem:[%s1403_s5 + $0x388] sm:$0xff]  ;;  %v322_v44 = vld [vmem:[%s1403_s5 + $0x278] sm:$0xff] }
  0x40   :  { %391 = vmatpush.msrb.mxu0 %v245_v56  ;;  %429 = vmatpush.msrb.mxu2 %v313_v57  ;;  %v252_v42 = vld [vmem:[%s1403_s5 + $0x48] sm:$0xff]  ;;  %v354_v45 = vld [vmem:[%s1403_s5 + $0x378] sm:$0xff] }
  0x41   :  { %411 = vmatpush.msrb.mxu1 %v277_v58  ;;  %449 = vmatpush.msrb.mxu3 %v345_v59  ;;  %v284_v43 = vld [vmem:[%s1403_s5 + $0x148] sm:$0xff]  ;;  %v250_v46 = vld [vmem:[%s1403_s5 + $0x38] sm:$0xff] }
  0x42   :  { %392 = vmatpush.msrb.mxu0 %v243_v60  ;;  %430 = vmatpush.msrb.mxu2 %v311_v61  ;;  %v282_v47 = vld [vmem:[%s1403_s5 + $0x138] sm:$0xff]  ;;  %v320_v48 = vld [vmem:[%s1403_s5 + $0x268] sm:$0xff] }
  0x43   :  { %412 = vmatpush.msrb.mxu1 %v275_v62  ;;  %450 = vmatpush.msrb.mxu3 %v343_v1  ;;  %v352_v49 = vld [vmem:[%s1403_s5 + $0x368] sm:$0xff]  ;;  %v318_v52 = vld [vmem:[%s1403_s5 + $0x258] sm:$0xff]  ;;  %v98_v62 = vld [vmem:[%s1405_s3] sm:$0xff] }
  0x44   :  { %457 = vmatpush.msra.mxu0 %v274_v63  ;;  %431 = vmatpush.msrb.mxu2 %v309_v3  ;;  %v248_v50 = vld [vmem:[%s1403_s5 + $0x28] sm:$0xff]  ;;  %v350_v53 = vld [vmem:[%s1403_s5 + $0x358] sm:$0xff]  ;;  %v105_v3 = vperm.slane %v98_v62, 0 }
  0x45   :  { %477 = vmatpush.msra.mxu1 %v306_v0  ;;  %451 = vmatpush.msrb.mxu3 %v341_v5  ;;  %v280_v51 = vld [vmem:[%s1403_s5 + $0x128] sm:$0xff]  ;;  %v246_v54 = vld [vmem:[%s1403_s5 + $0x18] sm:$0xff] }
  0x46   :  { %458 = vmatpush.msra.mxu0 %v272_v2  ;;  %432 = vmatpush.msrb.mxu2 %v307_v7  ;;  %v278_v55 = vld [vmem:[%s1403_s5 + $0x118] sm:$0xff]  ;;  %v316_v56 = vld [vmem:[%s1403_s5 + $0x248] sm:$0xff] }
  0x47   :  { %478 = vmatpush.msra.mxu1 %v304_v4  ;;  %452 = vmatpush.msrb.mxu3 %v339_v9  ;;  %v348_v57 = vld [vmem:[%s1403_s5 + $0x348] sm:$0xff]  ;;  %v314_v60 = vld [vmem:[%s1403_s5 + $0x238] sm:$0xff]  ;;  %v106_v4 = vperm.slane %v98_v62, 2 }
  0x48   :  { %459 = vmatpush.msra.mxu0 %v270_v6  ;;  %497 = vmatpush.msra.mxu2 %v338_v12  ;;  %v244_v58 = vld [vmem:[%s1403_s5 + $0x8] sm:$0xff]  ;;  %v346_v61 = vld [vmem:[%s1403_s5 + $0x338] sm:$0xff]  ;;  %v207_v12 = vperm.slane %v98_v62, 5 }
  0x49   :  { %479 = vmatpush.msra.mxu1 %v302_v8  ;;  %517 = vmatpush.msra.mxu3 %v370_v13  ;;  %v276_v59 = vld [vmem:[%s1403_s5 + $0x108] sm:$0xff]  ;;  %v310_v1 = vld [vmem:[%s1403_s5 + $0x218] sm:$0xff]  ;;  %v113_v8 = vperm.slane %v105_v3, 0  ;;  %v114_v9 = vperm.slane %v106_v4, 0  ;;  %v208_v13 = vperm.slane %v98_v62, 7  ;;  %v567_v3 = vld [vmem:[%s1407_s7 + $0xe0] sm:$0xff] }
  0x4a   :  { %460 = vmatpush.msra.mxu0 %v268_v10  ;;  %498 = vmatpush.msra.mxu2 %v336_v16  ;;  %v312_v63 = vld [vmem:[%s1403_s5 + $0x228] sm:$0xff]  ;;  %v342_v2 = vld [vmem:[%s1403_s5 + $0x318] sm:$0xff]  ;;  %v205_v10 = vperm.slane %v98_v62, 1  ;;  %v107_v16 = vperm.slane %v98_v62, 4 }
  0x4b   :  { %480 = vmatpush.msra.mxu1 %v300_v11  ;;  %518 = vmatpush.msra.mxu3 %v368_v17  ;;  %v344_v0 = vld [vmem:[%s1403_s5 + $0x328] sm:$0xff]  ;;  %v206_v11 = vperm.slane %v98_v62, 3  ;;  %v108_v17 = vperm.slane %v98_v62, 6  ;;  %v550_v62 = vld [vmem:[%s1407_s7 + $0x58] sm:$0xff] }
  0x4c   :  { %461 = vmatpush.msra.mxu0 %v266_v14  ;;  %499 = vmatpush.msra.mxu2 %v334_v20  ;;  %v308_v5 = vld [vmem:[%s1403_s5 + $0x208] sm:$0xff]  ;;  %v225_v20 = vld [vmem:[%s1406_s4] sm:$0xf]  ;;  %v546_v4 = vld [vmem:[%s1407_s7 + $0x38] sm:$0xff] }
  0x4d   :  { %481 = vmatpush.msra.mxu1 %v298_v15  ;;  %519 = vmatpush.msra.mxu3 %v366_v21  ;;  %v340_v6 = vld [vmem:[%s1403_s5 + $0x308] sm:$0xff]  ;;  %v215_v21 = vperm.slane %v207_v12, 1  ;;  %v542_v12 = vld [vmem:[%s1407_s7 + $0x18] sm:$0xff] }
  0x4e   :  { %462 = vmatpush.msra.mxu0 %v264_v18  ;;  %500 = vmatpush.msra.mxu2 %v332_v24  ;;  %v213_v18 = vperm.slane %v205_v10, 1  ;;  %v543_v10 = vld [vmem:[%s1407_s7 + $0x20] sm:$0xff] }
  0x4f   :  { %482 = vmatpush.msra.mxu1 %v296_v19  ;;  %520 = vmatpush.msra.mxu3 %v364_v25  ;;  %v214_v19 = vperm.slane %v206_v11, 1  ;;  %v563_v11 = vld [vmem:[%s1407_s7 + $0xc0] sm:$0xff] }
  0x50   :  { %463 = vmatpush.msra.mxu0 %v262_v22  ;;  %501 = vmatpush.msra.mxu2 %v330_v28  ;;  %v216_v22 = vperm.slane %v208_v13, 1  ;;  %v115_v28 = vperm.slane %v107_v16, 0  ;;  %v562_v13 = vld [vmem:[%s1407_s7 + $0xb8] sm:$0xff]  ;;  %v540_v16 = vld [vmem:[%s1407_s7 + $0x8] sm:$0xff] }
  0x51   :  { %483 = vmatpush.msra.mxu1 %v294_v23  ;;  %521 = vmatpush.msra.mxu3 %v362_v29  ;;  %v116_v29 = vperm.slane %v108_v17, 0  ;;  %v560_v17 = vld [vmem:[%s1407_s7 + $0xa8] sm:$0xff] }
  0x52   :  { %464 = vmatpush.msra.mxu0 %v260_v26  ;;  %502 = vmatpush.msra.mxu2 %v328_v32  ;;  %v227_v32 = vperm.slane %v225_v20, 0 }
  0x53   :  { %484 = vmatpush.msra.mxu1 %v292_v27  ;;  %522 = vmatpush.msra.mxu3 %v360_v33  ;;  %v228_v33 = vperm.slane %v225_v20, 1 }
  0x54   :  { %465 = vmatpush.msra.mxu0 %v258_v30  ;;  %503 = vmatpush.msra.mxu2 %v326_v36 }
  0x55   :  { %485 = vmatpush.msra.mxu1 %v290_v31  ;;  %523 = vmatpush.msra.mxu3 %v358_v37 }
  0x56   :  { %466 = vmatpush.msra.mxu0 %v256_v34  ;;  %504 = vmatpush.msra.mxu2 %v324_v40 }
  0x57   :  { %486 = vmatpush.msra.mxu1 %v288_v35  ;;  %524 = vmatpush.msra.mxu3 %v356_v41 }
  0x58   :  { %467 = vmatpush.msra.mxu0 %v254_v38  ;;  %505 = vmatpush.msra.mxu2 %v322_v44  ;;  %v229_v44 = vperm.slane %v225_v20, 2 }
  0x59   :  { %487 = vmatpush.msra.mxu1 %v286_v39  ;;  %525 = vmatpush.msra.mxu3 %v354_v45  ;;  %v230_v45 = vperm.slane %v225_v20, 3  ;;  %v558_v20 = vld [vmem:[%s1407_s7 + $0x98] sm:$0xff] }
  0x5a   :  { %468 = vmatpush.msra.mxu0 %v252_v42  ;;  %506 = vmatpush.msra.mxu2 %v320_v48 }
  0x5b   :  { %488 = vmatpush.msra.mxu1 %v284_v43  ;;  %526 = vmatpush.msra.mxu3 %v352_v49 }
  0x5c   :  { %469 = vmatpush.msra.mxu0 %v250_v46  ;;  %507 = vmatpush.msra.mxu2 %v318_v52 }
  0x5d   :  { %489 = vmatpush.msra.mxu1 %v282_v47  ;;  %527 = vmatpush.msra.mxu3 %v350_v53 }
  0x5e   :  { %470 = vmatpush.msra.mxu0 %v248_v50  ;;  %508 = vmatpush.msra.mxu2 %v316_v56  ;;  %v554_v50 = vld [vmem:[%s1407_s7 + $0x78] sm:$0xff] }
  0x5f   :  { %490 = vmatpush.msra.mxu1 %v280_v51  ;;  %528 = vmatpush.msra.mxu3 %v348_v57  ;;  %v570_v51 = vld [vmem:[%s1407_s7 + $0xf8] sm:$0xff] }
  0x60   :  { %471 = vmatpush.msra.mxu0 %v246_v54  ;;  %509 = vmatpush.msra.mxu2 %v314_v60  ;;  %v553_v54 = vld [vmem:[%s1407_s7 + $0x70] sm:$0xff] }
  0x61   :  { %491 = vmatpush.msra.mxu1 %v278_v55  ;;  %529 = vmatpush.msra.mxu3 %v346_v61  ;;  %v569_v55 = vld [vmem:[%s1407_s7 + $0xf0] sm:$0xff]  ;;  %v551_v61 = vld [vmem:[%s1407_s7 + $0x60] sm:$0xff] }
  0x62   :  { %472 = vmatpush.msra.mxu0 %v244_v58  ;;  %510 = vmatpush.msra.mxu2 %v312_v63  ;;  %v552_v58 = vld [vmem:[%s1407_s7 + $0x68] sm:$0xff]  ;;  %v549_v63 = vld [vmem:[%s1407_s7 + $0x50] sm:$0xff] }
  0x63   :  { %492 = vmatpush.msra.mxu1 %v276_v59  ;;  %530 = vmatpush.msra.mxu3 %v344_v0  ;;  %v548_v0 = vld [vmem:[%s1407_s7 + $0x48] sm:$0xff] }
  0x64   :  { %511 = vmatpush.msra.mxu2 %v310_v1  ;;  %v568_v1 = vld [vmem:[%s1407_s7 + $0xe8] sm:$0xff] }
  0x65   :  { %531 = vmatpush.msra.mxu3 %v342_v2  ;;  %v547_v2 = vld [vmem:[%s1407_s7 + $0x40] sm:$0xff] }
  0x66   :  { %512 = vmatpush.msra.mxu2 %v308_v5  ;;  %v566_v5 = vld [vmem:[%s1407_s7 + $0xd8] sm:$0xff] }
  0x67   :  { %532 = vmatpush.msra.mxu3 %v340_v6  ;;  %v545_v6 = vld [vmem:[%s1407_s7 + $0x30] sm:$0xff] }
  0x97   :  { %v102_v7 = vpop.permute.xlu0 %101 }
  0x98   :  { %v117_v14 = vmul.f32 %v113_v8, %v102_v7  ;;  %v118_v15 = vmul.f32 %v114_v9, %v102_v7  ;;  %v119_v36 = vmul.f32 %v115_v28, %v102_v7  ;;  %v120_v37 = vmul.f32 %v116_v29, %v102_v7  ;;  %v565_v7 = vld [vmem:[%s1407_s7 + $0xd0] sm:$0xff]  ;;  %v544_v8 = vld [vmem:[%s1407_s7 + $0x28] sm:$0xff] }
  0x99   :  { %v564_v9 = vld [vmem:[%s1407_s7 + $0xc8] sm:$0xff] }
  0x9f   :  { %v138_v23 = vpop.f32.mrf.mxu0  ;;  %v158_v24 = vpop.f32.mrf.mxu1 }
  0xa0   :  { %v203_v25 = vpop.permute.xlu0 %202  ;;  %v139_v26 = vadd.f32 %v138_v23, %v117_v14  ;;  %v159_v27 = vadd.f32 %v158_v24, %v118_v15  ;;  %v541_v14 = vld [vmem:[%s1407_s7 + $0x10] sm:$0xff]  ;;  %v555_v23 = vld [vmem:[%s1407_s7 + $0x80] sm:$0xff] }
  0xa1   :  { %v217_v30 = vmul.f32 %v213_v18, %v203_v25  ;;  %v218_v31 = vmul.f32 %v214_v19, %v203_v25  ;;  %v219_v38 = vmul.f32 %v215_v21, %v203_v25  ;;  %v220_v39 = vmul.f32 %v216_v22, %v203_v25  ;;  %v561_v15 = vld [vmem:[%s1407_s7 + $0xb0] sm:$0xff]  ;;  %v539_v18 = vld [vmem:[%s1407_s7] sm:$0xff]  ;;  %v556_v22 = vld [vmem:[%s1407_s7 + $0x88] sm:$0xff] }
  0xa2   :  { %v559_v19 = vld [vmem:[%s1407_s7 + $0xa0] sm:$0xff]  ;;  %v557_v21 = vld [vmem:[%s1407_s7 + $0x90] sm:$0xff] }
  0xa3   :  { %v221_v34 = vadd.f32 %v217_v30, %v139_v26  ;;  %v222_v35 = vadd.f32 %v218_v31, %v159_v27  ;;  %v371_v24 = vld [vmem:[%s1409_s6] sm:$0x3] }
  0xa4   :  { %v373_v26 = vperm.slane %v371_v24, 0  ;;  %v374_v30 = vperm.slane %v371_v24, 1 }
  0xa5   :  { %v235_v40 = vadd.f32 %v227_v32, %v221_v34  ;;  %v236_v41 = vadd.f32 %v228_v33, %v222_v35 }
  0xa6   :  { %v178_v42 = vpop.f32.mrf.mxu2  ;;  %v198_v43 = vpop.f32.mrf.mxu3 }
  0xa7   :  { %v179_v46 = vadd.f32 %v178_v42, %v119_v36  ;;  %v199_v47 = vadd.f32 %v198_v43, %v120_v37  ;;  %v239_v48 = vmax.f32 %v235_v40, 0.0  ;;  %v240_v49 = vmax.f32 %v236_v41, 0.0 }
  0xa9   :  { %v223_v52 = vadd.f32 %v219_v38, %v179_v46  ;;  %v224_v53 = vadd.f32 %v220_v39, %v199_v47  ;;  %393 = vmatmul.f32.vlgmr.msrb.gmra.mxu0 %v239_v48  ;;  %413 = vmatmul.f32.vlgmr.msrb.gmra.mxu1 %v240_v49 }
  0xaa   :  { %575 = vmatpush.msrb.mxu0 %v554_v50  ;;  %595 = vmatpush.msrb.mxu1 %v570_v51 }
  0xab   :  { %v237_v56 = vadd.f32 %v229_v44, %v223_v52  ;;  %v238_v57 = vadd.f32 %v230_v45, %v224_v53  ;;  %v649_v45 = vld [vmem:[%s1408_s8] ss:$0 sm:$0xff] }
  0xac   :  { %576 = vmatpush.msrb.mxu0 %v553_v54  ;;  %596 = vmatpush.msrb.mxu1 %v569_v55 }
  0xad   :  { %v241_v59 = vmax.f32 %v237_v56, 0.0  ;;  %v242_v60 = vmax.f32 %v238_v57, 0.0  ;;  %v615_v57 = vlaneseq }
  0xae   :  { %577 = vmatpush.msrb.mxu0 %v552_v58  ;;  %597 = vmatpush.msrb.mxu1 %v568_v1 }
  0xaf   :  { %433 = vmatmul.f32.vlgmr.msrb.gmra.mxu2 %v241_v59  ;;  %453 = vmatmul.f32.vlgmr.msrb.gmra.mxu3 %v242_v60 }
  0xb0   :  { %578 = vmatpush.msrb.mxu0 %v551_v61  ;;  %598 = vmatpush.msrb.mxu1 %v567_v3 }
  0xb1   :  { %473 = vmatmul.f32.vlgmr.msra.gmra.mxu0 %v239_v48  ;;  %493 = vmatmul.f32.vlgmr.msra.gmra.mxu1 %v240_v49 }
  0xb2   :  { %579 = vmatpush.msrb.mxu0 %v550_v62  ;;  %599 = vmatpush.msrb.mxu1 %v566_v5  ;;  %v616_v62 = vand.u32 127, %v615_v57 }
  0xb4   :  { %580 = vmatpush.msrb.mxu0 %v549_v63  ;;  %600 = vmatpush.msrb.mxu1 %v565_v7  ;;  %vm617_vm2 = vcmp.lt.s32.totalorder %v616_v62, 2 }
  0xb6   :  { %581 = vmatpush.msrb.mxu0 %v548_v0  ;;  %601 = vmatpush.msrb.mxu1 %v564_v9 }
  0xb7   :  { %513 = vmatmul.f32.vlgmr.msra.gmra.mxu2 %v241_v59  ;;  %533 = vmatmul.f32.vlgmr.msra.gmra.mxu3 %v242_v60 }
  0xb8   :  { %582 = vmatpush.msrb.mxu0 %v547_v2  ;;  %602 = vmatpush.msrb.mxu1 %v563_v11 }
  0xba   :  { %583 = vmatpush.msrb.mxu0 %v546_v4  ;;  %603 = vmatpush.msrb.mxu1 %v562_v13 }
  0xbc   :  { %584 = vmatpush.msrb.mxu0 %v545_v6  ;;  %604 = vmatpush.msrb.mxu1 %v561_v15 }
  0xbe   :  { %585 = vmatpush.msrb.mxu0 %v544_v8  ;;  %605 = vmatpush.msrb.mxu1 %v560_v17 }
  0xc0   :  { %586 = vmatpush.msrb.mxu0 %v543_v10  ;;  %606 = vmatpush.msrb.mxu1 %v559_v19 }
  0xc2   :  { %587 = vmatpush.msrb.mxu0 %v542_v12  ;;  %607 = vmatpush.msrb.mxu1 %v558_v20 }
  0xc4   :  { %588 = vmatpush.msrb.mxu0 %v541_v14  ;;  %608 = vmatpush.msrb.mxu1 %v557_v21 }
  0xc6   :  { %589 = vmatpush.msrb.mxu0 %v540_v16  ;;  %609 = vmatpush.msrb.mxu1 %v556_v22 }
  0xc8   :  { %590 = vmatpush.msrb.mxu0 %v539_v18  ;;  %610 = vmatpush.msrb.mxu1 %v555_v23 }
 0x126   :  { %v394_v25 = vpop.f32.mrf.mxu0  ;;  %v414_v28 = vpop.f32.mrf.mxu1 }
 0x127   :  { %v395_v27 = vadd.f32 %v394_v25, %v373_v26 }
 0x129   :  { %v415_v29 = vadd.f32 %v414_v28, %v395_v27 }
 0x12e   :  { %v474_v31 = vpop.f32.mrf.mxu0  ;;  %v494_v38 = vpop.f32.mrf.mxu1 }
 0x12f   :  { %v475_v35 = vadd.f32 %v474_v31, %v374_v30 }
 0x131   :  { %v495_v39 = vadd.f32 %v494_v38, %v475_v35 }
 0x132   :  { %v434_v32 = vpop.f32.mrf.mxu2  ;;  %v454_v33 = vpop.f32.mrf.mxu3 }
 0x133   :  { %v435_v34 = vadd.f32 %v434_v32, %v415_v29 }
 0x135   :  { %v455_v36 = vadd.f32 %v454_v33, %v435_v34 }
 0x137   :  { %v537_v37 = vmax.f32 %v455_v36, 0.0 }
 0x139   :  { %591 = vmatmul.f32.vlgmr.msrb.gmra.mxu0 %v537_v37 }
 0x13a   :  { %v514_v40 = vpop.f32.mrf.mxu2  ;;  %v534_v42 = vpop.f32.mrf.mxu3 }
 0x13b   :  { %v515_v41 = vadd.f32 %v514_v40, %v495_v39 }
 0x13d   :  { %v535_v43 = vadd.f32 %v534_v42, %v515_v41 }
 0x13f   :  { %v538_v44 = vmax.f32 %v535_v43, 0.0 }
 0x141   :  { %611 = vmatmul.f32.vlgmr.msrb.gmra.mxu1 %v538_v44 }
 0x1b6   :  { %v592_v46 = vpop.f32.mrf.mxu0 }
 0x1b7   :  { %v593_v47 = vadd.f32 %v649_v45, %v592_v46 }
 0x1be   :  { %v612_v48 = vpop.f32.mrf.mxu1 }
 0x1bf   :  { %v613_v49 = vadd.f32 %v612_v48, %v593_v47 }
 0x1c1   :  { %v622_v50 = vand.u32 2147483647, %v613_v49  ;;  %v619_v63 = vmax.f32 %v613_v49, 0.0  ;;  %vm620_vm1 = vcmp.ne.f32.partialorder %v613_v49, %v613_v49 }
 0x1c3   :  { %v623_v51 = vsub.f32 0.0, %v622_v50 }
 0x1c5   :  { %v624_v52 = vmul.f32 1.442695, %v623_v51 }
 0x1c7   :  { %650 = vpow2.f32 %v624_v52 }
 0x1cd   :  { %v651_v53 = vpop.eup %650 }
 0x1ce   :  { %v626_v54 = vadd.f32 1.0, %v651_v53  ;;  %v629_v55 = vmul.f32 -0.5, %v651_v53  ;;  %v632_v58 = vand.u32 2147483647, %v651_v53 }
 0x1d0   :  { %652 = vlog2.f32 %v626_v54  ;;  %v630_v56 = vadd.f32 1.0, %v629_v55  ;;  %vm633_vm0 = vcmp.lt.f32.partialorder %v632_v58, 0.0004427343 }
 0x1d1   :  { %654 = vtanh.f32 %v613_v49 }
 0x1d2   :  { %v631_v61 = vmul.f32 %v651_v53, %v630_v56 }
 0x1d6   :  { %v653_v59 = vpop.eup %652 }
 0x1d7   :  { %v628_v60 = vmul.f32 0.6931472, %v653_v59  ;;  %v655_v4 = vpop.eup %654 }
 0x1d9   :  { %v634_v0 = vsel %vm633_vm0, %v631_v61, %v628_v60 }
 0x1da   :  { %v635_v1 = vadd.f32 %v634_v0, %v619_v63 }
 0x1dc   :  { %v636_v2 = vsel %vm620_vm1, %v613_v49, %v635_v1 }
 0x1dd   :  { %v637_v3 = vadd.f32 1e-06, %v636_v2 }
 0x1df   :  { %v638_v5 = vsel %vm617_vm2, %v655_v4, %v637_v3 }
 0x1e0   :  { %640 = vst.msk [vmem:[%s1410_s9] sm:$0x3] %vm639_vm3, %v638_v5 }

</bundles_post_ra>
